<compile_context>
chip_gen: v7x
topology: tpu7x:2x2x1
jax: 0.10.0
libtpu: 0.0.40
codegen_flags: <defaults>
</compile_context>

<pallas_src>
import math
import numpy as np
import jax
import jax.numpy as jnp
from jax.experimental import pallas as pl
from jax.experimental.pallas import tpu as pltpu

LEAK = 0.2
BN_EPS = 0.8
COUT_PAD = 128   # final conv cout=1 padded to a full 128-lane store


# ---------------------------------------------------------------------------
# Fused kernel builder: layer0 (patches precomputed) -> mid blocks -> final conv
# ---------------------------------------------------------------------------
def _make_fused_kernel(n, mid_meta, final_meta):
    """mid_meta: list of (taps, p_out, cin, cout); final_meta: (taps, p_out, cin)."""
    t_fin, p_fin, cin_fin = final_meta

    def kernel(*refs):
        out_ref = refs[-1]

        # -- layer 0: Conv2d(3, 64, 4, 2, 1) + LeakyReLU(0.2) ------------------
        y = jnp.dot(refs[0][...], refs[1][...], preferred_element_type=jnp.float32)
        y = y + refs[2][...]
        y = jnp.where(y >= 0.0, y, LEAK * y)                  # (n*P0, 64) f32
        idx = 3

        # -- mid blocks: Conv2d(k=4,s=2,p=1) + BatchNorm(eps=0.8) + LeakyReLU ---
        for taps, p_out, cin, cout in mid_meta:
            g_ref, w_ref, b_ref, gam_ref, bet_ref = refs[idx:idx + 5]
            idx += 5
            rows = n * p_out
            # in-kernel im2col as a 0/1 selection matmul (MXU, no gathers);
            # resulting rows are ordered (tap, batch, out_pos)
            pat = jnp.dot(g_ref[...], y.astype(jnp.bfloat16),
                          preferred_element_type=jnp.float32).astype(jnp.bfloat16)
            w = w_ref[...]                                    # (taps*cin, cout) bf16
            acc = jnp.zeros((rows, cout), jnp.float32)
            for t in range(taps):                             # per-tap MXU matmuls
                acc = acc + jnp.dot(pat[t * rows:(t + 1) * rows, :],
                                    w[t * cin:(t + 1) * cin, :],
                                    preferred_element_type=jnp.float32)
            yb = acc + b_ref[...]
            # BatchNorm: batch statistics, biased var, single-pass variance
            mean = jnp.mean(yb, axis=0, keepdims=True)
            var = jnp.mean(yb * yb, axis=0, keepdims=True) - mean * mean
            yn = (yb - mean) * jax.lax.rsqrt(var + BN_EPS)
            yn = yn * gam_ref[...] + bet_ref[...]
            y = jnp.where(yn >= 0.0, yn, LEAK * yn)

        # -- final Conv2d(cin, 1, 3, 1, 1); cout padded to 128 (lane-dense) -----
        g_ref, w_ref, b_ref = refs[idx:idx + 3]
        rows = n * p_fin
        pat = jnp.dot(g_ref[...], y.astype(jnp.bfloat16),
                      preferred_element_type=jnp.float32).astype(jnp.bfloat16)
        w = w_ref[...]
        acc = jnp.zeros((rows, COUT_PAD), jnp.float32)
        for t in range(t_fin):
            acc = acc + jnp.dot(pat[t * rows:(t + 1) * rows, :],
                                w[t * cin_fin:(t + 1) * cin_fin, :],
                                preferred_element_type=jnp.float32)
        out_ref[...] = acc + b_ref[...]

    return kernel


def _full_spec(shape):
    # single grid point, block = whole array
    return pl.BlockSpec(shape, lambda: (0,) * len(shape))


# ---------------------------------------------------------------------------
# Host-side helpers (plain JAX / numpy glue)
# ---------------------------------------------------------------------------
def _im2col(x_nhwc, kh, kw, stride, pad):
    """(N*oh*ow, kh*kw*C) patches; feature order is (kh, kw, C)."""
    n, h, w, c = x_nhwc.shape
    xp = jnp.pad(x_nhwc, ((0, 0), (pad, pad), (pad, pad), (0, 0)))
    hp, wp = h + 2 * pad, w + 2 * pad
    oh = (hp - kh) // stride + 1
    ow = (wp - kw) // stride + 1
    cols = []
    for i in range(kh):
        for j in range(kw):
            cols.append(xp[:, i:i + stride * oh:stride, j:j + stride * ow:stride, :])
    p = jnp.stack(cols, axis=3)  # (N, oh, ow, kh*kw, C)
    return p.reshape(n * oh * ow, kh * kw * c), oh, ow


def _build_selection(n, ih, iw, k, stride, pad):
    """0/1 matrix mapping flattened (n, ih, iw) activations to conv patches.

    Row (t*n*oh*ow + b*oh*ow + oy*ow + ox) selects the input pixel read by
    kernel tap t at output (oy, ox) of sample b; taps that fall into the zero
    padding produce all-zero rows (implements the conv's zero padding).
    """
    oh = (ih + 2 * pad - k) // stride + 1
    ow = (iw + 2 * pad - k) // stride + 1
    taps, p_out, s_in = k * k, oh * ow, ih * iw
    g = np.zeros((taps * n * p_out, n * s_in), dtype=np.float32)
    for t in range(taps):
        ki, kj = t // k, t % k
        for b in range(n):
            for oy in range(oh):
                iy = stride * oy + ki - pad
                if not (0 <= iy < ih):
                    continue
                for ox in range(ow):
                    ix = stride * ox + kj - pad
                    if 0 <= ix < iw:
                        r = t * n * p_out + b * p_out + oy * ow + ox
                        g[r, b * s_in + iy * iw + ix] = 1.0
    return jnp.asarray(g, dtype=jnp.bfloat16), oh, ow


def build_configs(input_size=16):
    """(kind, c_in, c_out, k, stride, pad) mirroring DiscriminatorNet.__init__."""
    cfgs = [("conv_lrelu", 3, 64, 4, 2, 1)]
    n_blocks = int(math.log2(input_size / 8))
    last = 64
    for i in range(n_blocks):
        cfgs.append(("conv_bn_lrelu", 64 * 2 ** i, 128 * 2 ** i, 4, 2, 1))
        last = 128 * 2 ** i
    cfgs.append(("conv", last, 1, 3, 1, 1))
    return cfgs


def init_params(key, configs):
    params = []
    for kind, cin, cout, k, _s, _p in configs:
        key, kw_, kb_ = jax.random.split(key, 3)
        bound = 1.0 / math.sqrt(cin * k * k)
        p = {
            "W": jax.random.uniform(kw_, (cout, cin, k, k), jnp.float32, -bound, bound),
            "b": jax.random.uniform(kb_, (cout,), jnp.float32, -bound, bound),
        }
        if kind == "conv_bn_lrelu":
            p["gamma"] = jnp.ones((cout,), jnp.float32)
            p["beta"] = jnp.zeros((cout,), jnp.float32)
        params.append(p)
    return params


# ---------------------------------------------------------------------------
# Forward pass (single fused pallas_call)
# ---------------------------------------------------------------------------
def discriminator_forward(x_nchw, params, configs):
    n = x_nchw.shape[0]
    x = jnp.transpose(x_nchw, (0, 2, 3, 1)).astype(jnp.float32)   # -> NHWC

    flops = 0
    transcendentals = 0

    # layer-0 patches (3-channel input: smaller than an in-kernel selection matrix)
    _, cin0, cout0, k0, s0, pd0 = configs[0]
    patches0, oh, ow = _im2col(x, k0, k0, s0, pd0)
    w0 = jnp.transpose(params[0]["W"], (2, 3, 1, 0)).reshape(k0 * k0 * cin0, cout0)
    inputs = [patches0.astype(jnp.bfloat16),
              w0.astype(jnp.bfloat16),
              params[0]["b"].reshape(1, cout0).astype(jnp.float32)]
    flops += 2 * n * oh * ow * (k0 * k0 * cin0) * cout0

    mid_meta = []
    ih, iw = oh, ow
    for (kind, cin, cout, k, s, pd), p in zip(configs[1:-1], params[1:-1]):
        g, oh, ow = _build_selection(n, ih, iw, k, s, pd)
        w = jnp.transpose(p["W"], (2, 3, 1, 0)).reshape(k * k * cin, cout)
        inputs += [g,
                   w.astype(jnp.bfloat16),
                   p["b"].reshape(1, cout).astype(jnp.float32),
                   p["gamma"].reshape(1, cout).astype(jnp.float32),
                   p["beta"].reshape(1, cout).astype(jnp.float32)]
        mid_meta.append((k * k, oh * ow, cin, cout))
        flops += 2 * g.shape[0] * g.shape[1] * cin             # selection matmul
        flops += 2 * (k * k) * (n * oh * ow) * cin * cout      # per-tap matmuls
        transcendentals += cout                                 # BN rsqrt
        ih, iw = oh, ow

    _, cinf, coutf, kf, sf, pdf = configs[-1]
    g, oh, ow = _build_selection(n, ih, iw, kf, sf, pdf)
    wf = jnp.transpose(params[-1]["W"], (2, 3, 1, 0)).reshape(kf * kf * cinf, coutf)
    wf = jnp.pad(wf, ((0, 0), (0, COUT_PAD - coutf)))
    bf = jnp.pad(params[-1]["b"], (0, COUT_PAD - coutf)).reshape(1, COUT_PAD)
    inputs += [g, wf.astype(jnp.bfloat16), bf.astype(jnp.float32)]
    final_meta = (kf * kf, oh * ow, cinf)
    flops += 2 * g.shape[0] * g.shape[1] * cinf
    flops += 2 * (kf * kf) * (n * oh * ow) * cinf * COUT_PAD

    out_shape = (n * oh * ow, COUT_PAD)
    bytes_accessed = sum(int(np.prod(a.shape)) * a.dtype.itemsize for a in inputs)
    bytes_accessed += int(np.prod(out_shape)) * 4

    kernel = _make_fused_kernel(n, mid_meta, final_meta)
    y = pl.pallas_call(
        kernel,
        out_shape=jax.ShapeDtypeStruct(out_shape, jnp.float32),
        in_specs=[_full_spec(a.shape) for a in inputs],
        out_specs=_full_spec(out_shape),
        compiler_params=pltpu.CompilerParams(vmem_limit_bytes=32 * 1024 * 1024),
        cost_estimate=pl.CostEstimate(flops=int(flops),
                                      transcendentals=int(transcendentals),
                                      bytes_accessed=int(bytes_accessed)),
    )(*inputs)

    # lane-dense (m, 128) output -> real cout=1 channel -> NCHW
    out = y[:, :coutf].reshape(n, oh, ow, coutf)
    return jnp.transpose(out, (0, 3, 1, 2))


# ---------------------------------------------------------------------------
# Pure-JAX f32 reference (for a correctness check only)
# ---------------------------------------------------------------------------
def _reference_forward(x_nchw, params, configs):
    x = x_nchw.astype(jnp.float32)
    for (kind, cin, cout, k, s, pd), p in zip(configs, params):
        y = jax.lax.conv_general_dilated(
            x, p["W"], window_strides=(s, s), padding=[(pd, pd), (pd, pd)],
            dimension_numbers=("NCHW", "OIHW", "NCHW"))
        y = y + p["b"].reshape(1, cout, 1, 1)
        if kind == "conv_bn_lrelu":
            mean = jnp.mean(y, axis=(0, 2, 3), keepdims=True)
            var = jnp.mean((y - mean) ** 2, axis=(0, 2, 3), keepdims=True)
            y = (y - mean) * jax.lax.rsqrt(var + BN_EPS)
            y = y * p["gamma"].reshape(1, cout, 1, 1) + p["beta"].reshape(1, cout, 1, 1)
        if kind in ("conv_lrelu", "conv_bn_lrelu"):
            y = jnp.where(y >= 0.0, y, LEAK * y)
        x = y
    return x


if __name__ == "__main__":
    INPUT_SIZE = 16   # log2(16/8) = 1 BN block, consistent with the module
    key = jax.random.PRNGKey(0)
    k_x, k_p = jax.random.split(key)

    configs = build_configs(INPUT_SIZE)
    params = init_params(k_p, configs)
    x = jax.random.normal(k_x, (2, 3, INPUT_SIZE, INPUT_SIZE), jnp.float32)

    out = discriminator_forward(x, params, configs)
    out = jax.block_until_ready(out)
    assert out.shape == (2, 1, INPUT_SIZE // 4, INPUT_SIZE // 4), out.shape

    # correctness vs. f32 reference (bf16 MXU inputs -> loose tolerance)
    ref = jax.block_until_ready(_reference_forward(x, params, configs))
    max_err = float(jnp.max(jnp.abs(out - ref)))
    assert max_err < 5e-2, f"max abs err {max_err}"

    print("KERNEL_OK")
</pallas_src>

<mosaic_0001>
module attributes {stable_mosaic.version = 11 : i64} {
  func.func @kernel(%arg0: memref<128x48xbf16, #tpu.memory_space<vmem>>, %arg1: memref<48x64xbf16, #tpu.memory_space<vmem>>, %arg2: memref<1x64xf32, #tpu.memory_space<vmem>>, %arg3: memref<512x128xbf16, #tpu.memory_space<vmem>>, %arg4: memref<1024x128xbf16, #tpu.memory_space<vmem>>, %arg5: memref<1x128xf32, #tpu.memory_space<vmem>>, %arg6: memref<1x128xf32, #tpu.memory_space<vmem>>, %arg7: memref<1x128xf32, #tpu.memory_space<vmem>>, %arg8: memref<288x32xbf16, #tpu.memory_space<vmem>>, %arg9: memref<1152x128xbf16, #tpu.memory_space<vmem>>, %arg10: memref<1x128xf32, #tpu.memory_space<vmem>>, %arg11: memref<32x128xf32, #tpu.memory_space<vmem>>) attributes {dimension_semantics = [], scalar_prefetch = 0 : i64, scratch_operands = 0 : i64, tpu.core_type = #tpu.core_type<tc>} {
    %c0 = arith.constant 0 : index
    %c0_0 = arith.constant 0 : index
    %0 = vector.load %arg0[%c0, %c0_0] : memref<128x48xbf16, #tpu.memory_space<vmem>>, vector<128x48xbf16>
    %c0_1 = arith.constant 0 : index
    %c0_2 = arith.constant 0 : index
    %1 = vector.load %arg1[%c0_1, %c0_2] : memref<48x64xbf16, #tpu.memory_space<vmem>>, vector<48x64xbf16>
    %cst = arith.constant dense<0.000000e+00> : vector<128x64xf32>
    %2 = tpu.matmul %0, %1, %cst {dimension_numbers = #tpu.dot_dimension_numbers<[1], [0], [0], [1], [0, 0, 1, 1], [], []>} : vector<128x48xbf16>, vector<48x64xbf16>, vector<128x64xf32> -> vector<128x64xf32>
    %c0_3 = arith.constant 0 : index
    %c0_4 = arith.constant 0 : index
    %3 = vector.load %arg2[%c0_3, %c0_4] : memref<1x64xf32, #tpu.memory_space<vmem>>, vector<1x64xf32>
    %4 = vector.broadcast %3 : vector<1x64xf32> to vector<128x64xf32>
    %5 = arith.addf %2, %4 : vector<128x64xf32>
    %cst_5 = arith.constant 0.000000e+00 : f32
    %6 = vector.broadcast %cst_5 : f32 to vector<128x64xf32>
    %7 = arith.cmpf oge, %5, %6 : vector<128x64xf32>
    %cst_6 = arith.constant 2.000000e-01 : f32
    %8 = vector.broadcast %cst_6 : f32 to vector<128x64xf32>
    %9 = arith.mulf %8, %5 : vector<128x64xf32>
    %10 = arith.select %7, %5, %9 : vector<128x64xi1>, vector<128x64xf32>
    %c0_7 = arith.constant 0 : index
    %c0_8 = arith.constant 0 : index
    %11 = vector.load %arg3[%c0_7, %c0_8] : memref<512x128xbf16, #tpu.memory_space<vmem>>, vector<512x128xbf16>
    %12 = arith.truncf %10 : vector<128x64xf32> to vector<128x64xbf16>
    %cst_9 = arith.constant dense<0.000000e+00> : vector<512x64xf32>
    %13 = tpu.matmul %11, %12, %cst_9 {dimension_numbers = #tpu.dot_dimension_numbers<[1], [0], [0], [1], [0, 0, 1, 1], [], []>} : vector<512x128xbf16>, vector<128x64xbf16>, vector<512x64xf32> -> vector<512x64xf32>
    %14 = arith.truncf %13 : vector<512x64xf32> to vector<512x64xbf16>
    %c0_10 = arith.constant 0 : index
    %c0_11 = arith.constant 0 : index
    %15 = vector.load %arg4[%c0_10, %c0_11] : memref<1024x128xbf16, #tpu.memory_space<vmem>>, vector<1024x128xbf16>
    %cst_12 = arith.constant 0.000000e+00 : f32
    %16 = vector.broadcast %cst_12 : f32 to vector<32x128xf32>
    %17 = vector.extract_strided_slice %14 {offsets = [0, 0], sizes = [32, 64], strides = [1, 1]} : vector<512x64xbf16> to vector<32x64xbf16>
    %18 = vector.extract_strided_slice %15 {offsets = [0, 0], sizes = [64, 128], strides = [1, 1]} : vector<1024x128xbf16> to vector<64x128xbf16>
    %cst_13 = arith.constant dense<0.000000e+00> : vector<32x128xf32>
    %19 = tpu.matmul %17, %18, %cst_13 {dimension_numbers = #tpu.dot_dimension_numbers<[1], [0], [0], [1], [0, 0, 1, 1], [], []>} : vector<32x64xbf16>, vector<64x128xbf16>, vector<32x128xf32> -> vector<32x128xf32>
    %20 = arith.addf %16, %19 : vector<32x128xf32>
    %21 = vector.extract_strided_slice %14 {offsets = [32, 0], sizes = [32, 64], strides = [1, 1]} : vector<512x64xbf16> to vector<32x64xbf16>
    %22 = vector.extract_strided_slice %15 {offsets = [64, 0], sizes = [64, 128], strides = [1, 1]} : vector<1024x128xbf16> to vector<64x128xbf16>
    %cst_14 = arith.constant dense<0.000000e+00> : vector<32x128xf32>
    %23 = tpu.matmul %21, %22, %cst_14 {dimension_numbers = #tpu.dot_dimension_numbers<[1], [0], [0], [1], [0, 0, 1, 1], [], []>} : vector<32x64xbf16>, vector<64x128xbf16>, vector<32x128xf32> -> vector<32x128xf32>
    %24 = arith.addf %20, %23 : vector<32x128xf32>
    %25 = vector.extract_strided_slice %14 {offsets = [64, 0], sizes = [32, 64], strides = [1, 1]} : vector<512x64xbf16> to vector<32x64xbf16>
    %26 = vector.extract_strided_slice %15 {offsets = [128, 0], sizes = [64, 128], strides = [1, 1]} : vector<1024x128xbf16> to vector<64x128xbf16>
    %cst_15 = arith.constant dense<0.000000e+00> : vector<32x128xf32>
    %27 = tpu.matmul %25, %26, %cst_15 {dimension_numbers = #tpu.dot_dimension_numbers<[1], [0], [0], [1], [0, 0, 1, 1], [], []>} : vector<32x64xbf16>, vector<64x128xbf16>, vector<32x128xf32> -> vector<32x128xf32>
    %28 = arith.addf %24, %27 : vector<32x128xf32>
    %29 = vector.extract_strided_slice %14 {offsets = [96, 0], sizes = [32, 64], strides = [1, 1]} : vector<512x64xbf16> to vector<32x64xbf16>
    %30 = vector.extract_strided_slice %15 {offsets = [192, 0], sizes = [64, 128], strides = [1, 1]} : vector<1024x128xbf16> to vector<64x128xbf16>
    %cst_16 = arith.constant dense<0.000000e+00> : vector<32x128xf32>
    %31 = tpu.matmul %29, %30, %cst_16 {dimension_numbers = #tpu.dot_dimension_numbers<[1], [0], [0], [1], [0, 0, 1, 1], [], []>} : vector<32x64xbf16>, vector<64x128xbf16>, vector<32x128xf32> -> vector<32x128xf32>
    %32 = arith.addf %28, %31 : vector<32x128xf32>
    %33 = vector.extract_strided_slice %14 {offsets = [128, 0], sizes = [32, 64], strides = [1, 1]} : vector<512x64xbf16> to vector<32x64xbf16>
    %34 = vector.extract_strided_slice %15 {offsets = [256, 0], sizes = [64, 128], strides = [1, 1]} : vector<1024x128xbf16> to vector<64x128xbf16>
    %cst_17 = arith.constant dense<0.000000e+00> : vector<32x128xf32>
    %35 = tpu.matmul %33, %34, %cst_17 {dimension_numbers = #tpu.dot_dimension_numbers<[1], [0], [0], [1], [0, 0, 1, 1], [], []>} : vector<32x64xbf16>, vector<64x128xbf16>, vector<32x128xf32> -> vector<32x128xf32>
    %36 = arith.addf %32, %35 : vector<32x128xf32>
    %37 = vector.extract_strided_slice %14 {offsets = [160, 0], sizes = [32, 64], strides = [1, 1]} : vector<512x64xbf16> to vector<32x64xbf16>
    %38 = vector.extract_strided_slice %15 {offsets = [320, 0], sizes = [64, 128], strides = [1, 1]} : vector<1024x128xbf16> to vector<64x128xbf16>
    %cst_18 = arith.constant dense<0.000000e+00> : vector<32x128xf32>
    %39 = tpu.matmul %37, %38, %cst_18 {dimension_numbers = #tpu.dot_dimension_numbers<[1], [0], [0], [1], [0, 0, 1, 1], [], []>} : vector<32x64xbf16>, vector<64x128xbf16>, vector<32x128xf32> -> vector<32x128xf32>
    %40 = arith.addf %36, %39 : vector<32x128xf32>
    %41 = vector.extract_strided_slice %14 {offsets = [192, 0], sizes = [32, 64], strides = [1, 1]} : vector<512x64xbf16> to vector<32x64xbf16>
    %42 = vector.extract_strided_slice %15 {offsets = [384, 0], sizes = [64, 128], strides = [1, 1]} : vector<1024x128xbf16> to vector<64x128xbf16>
    %cst_19 = arith.constant dense<0.000000e+00> : vector<32x128xf32>
    %43 = tpu.matmul %41, %42, %cst_19 {dimension_numbers = #tpu.dot_dimension_numbers<[1], [0], [0], [1], [0, 0, 1, 1], [], []>} : vector<32x64xbf16>, vector<64x128xbf16>, vector<32x128xf32> -> vector<32x128xf32>
    %44 = arith.addf %40, %43 : vector<32x128xf32>
    %45 = vector.extract_strided_slice %14 {offsets = [224, 0], sizes = [32, 64], strides = [1, 1]} : vector<512x64xbf16> to vector<32x64xbf16>
    %46 = vector.extract_strided_slice %15 {offsets = [448, 0], sizes = [64, 128], strides = [1, 1]} : vector<1024x128xbf16> to vector<64x128xbf16>
    %cst_20 = arith.constant dense<0.000000e+00> : vector<32x128xf32>
    %47 = tpu.matmul %45, %46, %cst_20 {dimension_numbers = #tpu.dot_dimension_numbers<[1], [0], [0], [1], [0, 0, 1, 1], [], []>} : vector<32x64xbf16>, vector<64x128xbf16>, vector<32x128xf32> -> vector<32x128xf32>
    %48 = arith.addf %44, %47 : vector<32x128xf32>
    %49 = vector.extract_strided_slice %14 {offsets = [256, 0], sizes = [32, 64], strides = [1, 1]} : vector<512x64xbf16> to vector<32x64xbf16>
    %50 = vector.extract_strided_slice %15 {offsets = [512, 0], sizes = [64, 128], strides = [1, 1]} : vector<1024x128xbf16> to vector<64x128xbf16>
    %cst_21 = arith.constant dense<0.000000e+00> : vector<32x128xf32>
    %51 = tpu.matmul %49, %50, %cst_21 {dimension_numbers = #tpu.dot_dimension_numbers<[1], [0], [0], [1], [0, 0, 1, 1], [], []>} : vector<32x64xbf16>, vector<64x128xbf16>, vector<32x128xf32> -> vector<32x128xf32>
    %52 = arith.addf %48, %51 : vector<32x128xf32>
    %53 = vector.extract_strided_slice %14 {offsets = [288, 0], sizes = [32, 64], strides = [1, 1]} : vector<512x64xbf16> to vector<32x64xbf16>
    %54 = vector.extract_strided_slice %15 {offsets = [576, 0], sizes = [64, 128], strides = [1, 1]} : vector<1024x128xbf16> to vector<64x128xbf16>
    %cst_22 = arith.constant dense<0.000000e+00> : vector<32x128xf32>
    %55 = tpu.matmul %53, %54, %cst_22 {dimension_numbers = #tpu.dot_dimension_numbers<[1], [0], [0], [1], [0, 0, 1, 1], [], []>} : vector<32x64xbf16>, vector<64x128xbf16>, vector<32x128xf32> -> vector<32x128xf32>
    %56 = arith.addf %52, %55 : vector<32x128xf32>
    %57 = vector.extract_strided_slice %14 {offsets = [320, 0], sizes = [32, 64], strides = [1, 1]} : vector<512x64xbf16> to vector<32x64xbf16>
    %58 = vector.extract_strided_slice %15 {offsets = [640, 0], sizes = [64, 128], strides = [1, 1]} : vector<1024x128xbf16> to vector<64x128xbf16>
    %cst_23 = arith.constant dense<0.000000e+00> : vector<32x128xf32>
    %59 = tpu.matmul %57, %58, %cst_23 {dimension_numbers = #tpu.dot_dimension_numbers<[1], [0], [0], [1], [0, 0, 1, 1], [], []>} : vector<32x64xbf16>, vector<64x128xbf16>, vector<32x128xf32> -> vector<32x128xf32>
    %60 = arith.addf %56, %59 : vector<32x128xf32>
    %61 = vector.extract_strided_slice %14 {offsets = [352, 0], sizes = [32, 64], strides = [1, 1]} : vector<512x64xbf16> to vector<32x64xbf16>
    %62 = vector.extract_strided_slice %15 {offsets = [704, 0], sizes = [64, 128], strides = [1, 1]} : vector<1024x128xbf16> to vector<64x128xbf16>
    %cst_24 = arith.constant dense<0.000000e+00> : vector<32x128xf32>
    %63 = tpu.matmul %61, %62, %cst_24 {dimension_numbers = #tpu.dot_dimension_numbers<[1], [0], [0], [1], [0, 0, 1, 1], [], []>} : vector<32x64xbf16>, vector<64x128xbf16>, vector<32x128xf32> -> vector<32x128xf32>
    %64 = arith.addf %60, %63 : vector<32x128xf32>
    %65 = vector.extract_strided_slice %14 {offsets = [384, 0], sizes = [32, 64], strides = [1, 1]} : vector<512x64xbf16> to vector<32x64xbf16>
    %66 = vector.extract_strided_slice %15 {offsets = [768, 0], sizes = [64, 128], strides = [1, 1]} : vector<1024x128xbf16> to vector<64x128xbf16>
    %cst_25 = arith.constant dense<0.000000e+00> : vector<32x128xf32>
    %67 = tpu.matmul %65, %66, %cst_25 {dimension_numbers = #tpu.dot_dimension_numbers<[1], [0], [0], [1], [0, 0, 1, 1], [], []>} : vector<32x64xbf16>, vector<64x128xbf16>, vector<32x128xf32> -> vector<32x128xf32>
    %68 = arith.addf %64, %67 : vector<32x128xf32>
    %69 = vector.extract_strided_slice %14 {offsets = [416, 0], sizes = [32, 64], strides = [1, 1]} : vector<512x64xbf16> to vector<32x64xbf16>
    %70 = vector.extract_strided_slice %15 {offsets = [832, 0], sizes = [64, 128], strides = [1, 1]} : vector<1024x128xbf16> to vector<64x128xbf16>
    %cst_26 = arith.constant dense<0.000000e+00> : vector<32x128xf32>
    %71 = tpu.matmul %69, %70, %cst_26 {dimension_numbers = #tpu.dot_dimension_numbers<[1], [0], [0], [1], [0, 0, 1, 1], [], []>} : vector<32x64xbf16>, vector<64x128xbf16>, vector<32x128xf32> -> vector<32x128xf32>
    %72 = arith.addf %68, %71 : vector<32x128xf32>
    %73 = vector.extract_strided_slice %14 {offsets = [448, 0], sizes = [32, 64], strides = [1, 1]} : vector<512x64xbf16> to vector<32x64xbf16>
    %74 = vector.extract_strided_slice %15 {offsets = [896, 0], sizes = [64, 128], strides = [1, 1]} : vector<1024x128xbf16> to vector<64x128xbf16>
    %cst_27 = arith.constant dense<0.000000e+00> : vector<32x128xf32>
    %75 = tpu.matmul %73, %74, %cst_27 {dimension_numbers = #tpu.dot_dimension_numbers<[1], [0], [0], [1], [0, 0, 1, 1], [], []>} : vector<32x64xbf16>, vector<64x128xbf16>, vector<32x128xf32> -> vector<32x128xf32>
    %76 = arith.addf %72, %75 : vector<32x128xf32>
    %77 = vector.extract_strided_slice %14 {offsets = [480, 0], sizes = [32, 64], strides = [1, 1]} : vector<512x64xbf16> to vector<32x64xbf16>
    %78 = vector.extract_strided_slice %15 {offsets = [960, 0], sizes = [64, 128], strides = [1, 1]} : vector<1024x128xbf16> to vector<64x128xbf16>
    %cst_28 = arith.constant dense<0.000000e+00> : vector<32x128xf32>
    %79 = tpu.matmul %77, %78, %cst_28 {dimension_numbers = #tpu.dot_dimension_numbers<[1], [0], [0], [1], [0, 0, 1, 1], [], []>} : vector<32x64xbf16>, vector<64x128xbf16>, vector<32x128xf32> -> vector<32x128xf32>
    %80 = arith.addf %76, %79 : vector<32x128xf32>
    %c0_29 = arith.constant 0 : index
    %c0_30 = arith.constant 0 : index
    %81 = vector.load %arg5[%c0_29, %c0_30] : memref<1x128xf32, #tpu.memory_space<vmem>>, vector<1x128xf32>
    %82 = vector.broadcast %81 : vector<1x128xf32> to vector<32x128xf32>
    %83 = arith.addf %80, %82 : vector<32x128xf32>
    %cst_31 = arith.constant dense<0.000000e+00> : vector<128xf32>
    %84 = vector.multi_reduction <add>, %83, %cst_31 [0] : vector<32x128xf32> to vector<128xf32>
    %85 = vector.shape_cast %84 : vector<128xf32> to vector<1x128xf32>
    %cst_32 = arith.constant 3.200000e+01 : f32
    %86 = vector.broadcast %cst_32 : f32 to vector<1x128xf32>
    %87 = arith.divf %85, %86 : vector<1x128xf32>
    %88 = arith.mulf %83, %83 : vector<32x128xf32>
    %cst_33 = arith.constant dense<0.000000e+00> : vector<128xf32>
    %89 = vector.multi_reduction <add>, %88, %cst_33 [0] : vector<32x128xf32> to vector<128xf32>
    %90 = vector.shape_cast %89 : vector<128xf32> to vector<1x128xf32>
    %cst_34 = arith.constant 3.200000e+01 : f32
    %91 = vector.broadcast %cst_34 : f32 to vector<1x128xf32>
    %92 = arith.divf %90, %91 : vector<1x128xf32>
    %93 = arith.mulf %87, %87 : vector<1x128xf32>
    %94 = arith.subf %92, %93 : vector<1x128xf32>
    %95 = vector.broadcast %87 : vector<1x128xf32> to vector<32x128xf32>
    %96 = arith.subf %83, %95 : vector<32x128xf32>
    %cst_35 = arith.constant 8.000000e-01 : f32
    %97 = vector.broadcast %cst_35 : f32 to vector<1x128xf32>
    %98 = arith.addf %94, %97 : vector<1x128xf32>
    %99 = math.rsqrt %98 : vector<1x128xf32>
    %100 = vector.broadcast %99 : vector<1x128xf32> to vector<32x128xf32>
    %101 = arith.mulf %96, %100 : vector<32x128xf32>
    %c0_36 = arith.constant 0 : index
    %c0_37 = arith.constant 0 : index
    %102 = vector.load %arg6[%c0_36, %c0_37] : memref<1x128xf32, #tpu.memory_space<vmem>>, vector<1x128xf32>
    %103 = vector.broadcast %102 : vector<1x128xf32> to vector<32x128xf32>
    %104 = arith.mulf %101, %103 : vector<32x128xf32>
    %c0_38 = arith.constant 0 : index
    %c0_39 = arith.constant 0 : index
    %105 = vector.load %arg7[%c0_38, %c0_39] : memref<1x128xf32, #tpu.memory_space<vmem>>, vector<1x128xf32>
    %106 = vector.broadcast %105 : vector<1x128xf32> to vector<32x128xf32>
    %107 = arith.addf %104, %106 : vector<32x128xf32>
    %cst_40 = arith.constant 0.000000e+00 : f32
    %108 = vector.broadcast %cst_40 : f32 to vector<32x128xf32>
    %109 = arith.cmpf oge, %107, %108 : vector<32x128xf32>
    %cst_41 = arith.constant 2.000000e-01 : f32
    %110 = vector.broadcast %cst_41 : f32 to vector<32x128xf32>
    %111 = arith.mulf %110, %107 : vector<32x128xf32>
    %112 = arith.select %109, %107, %111 : vector<32x128xi1>, vector<32x128xf32>
    %c0_42 = arith.constant 0 : index
    %c0_43 = arith.constant 0 : index
    %113 = vector.load %arg8[%c0_42, %c0_43] : memref<288x32xbf16, #tpu.memory_space<vmem>>, vector<288x32xbf16>
    %114 = arith.truncf %112 : vector<32x128xf32> to vector<32x128xbf16>
    %cst_44 = arith.constant dense<0.000000e+00> : vector<288x128xf32>
    %115 = tpu.matmul %113, %114, %cst_44 {dimension_numbers = #tpu.dot_dimension_numbers<[1], [0], [0], [1], [0, 0, 1, 1], [], []>} : vector<288x32xbf16>, vector<32x128xbf16>, vector<288x128xf32> -> vector<288x128xf32>
    %116 = arith.truncf %115 : vector<288x128xf32> to vector<288x128xbf16>
    %c0_45 = arith.constant 0 : index
    %c0_46 = arith.constant 0 : index
    %117 = vector.load %arg9[%c0_45, %c0_46] : memref<1152x128xbf16, #tpu.memory_space<vmem>>, vector<1152x128xbf16>
    %cst_47 = arith.constant 0.000000e+00 : f32
    %118 = vector.broadcast %cst_47 : f32 to vector<32x128xf32>
    %119 = vector.extract_strided_slice %116 {offsets = [0, 0], sizes = [32, 128], strides = [1, 1]} : vector<288x128xbf16> to vector<32x128xbf16>
    %120 = vector.extract_strided_slice %117 {offsets = [0, 0], sizes = [128, 128], strides = [1, 1]} : vector<1152x128xbf16> to vector<128x128xbf16>
    %cst_48 = arith.constant dense<0.000000e+00> : vector<32x128xf32>
    %121 = tpu.matmul %119, %120, %cst_48 {dimension_numbers = #tpu.dot_dimension_numbers<[1], [0], [0], [1], [0, 0, 1, 1], [], []>} : vector<32x128xbf16>, vector<128x128xbf16>, vector<32x128xf32> -> vector<32x128xf32>
    %122 = arith.addf %118, %121 : vector<32x128xf32>
    %123 = vector.extract_strided_slice %116 {offsets = [32, 0], sizes = [32, 128], strides = [1, 1]} : vector<288x128xbf16> to vector<32x128xbf16>
    %124 = vector.extract_strided_slice %117 {offsets = [128, 0], sizes = [128, 128], strides = [1, 1]} : vector<1152x128xbf16> to vector<128x128xbf16>
    %cst_49 = arith.constant dense<0.000000e+00> : vector<32x128xf32>
    %125 = tpu.matmul %123, %124, %cst_49 {dimension_numbers = #tpu.dot_dimension_numbers<[1], [0], [0], [1], [0, 0, 1, 1], [], []>} : vector<32x128xbf16>, vector<128x128xbf16>, vector<32x128xf32> -> vector<32x128xf32>
    %126 = arith.addf %122, %125 : vector<32x128xf32>
    %127 = vector.extract_strided_slice %116 {offsets = [64, 0], sizes = [32, 128], strides = [1, 1]} : vector<288x128xbf16> to vector<32x128xbf16>
    %128 = vector.extract_strided_slice %117 {offsets = [256, 0], sizes = [128, 128], strides = [1, 1]} : vector<1152x128xbf16> to vector<128x128xbf16>
    %cst_50 = arith.constant dense<0.000000e+00> : vector<32x128xf32>
    %129 = tpu.matmul %127, %128, %cst_50 {dimension_numbers = #tpu.dot_dimension_numbers<[1], [0], [0], [1], [0, 0, 1, 1], [], []>} : vector<32x128xbf16>, vector<128x128xbf16>, vector<32x128xf32> -> vector<32x128xf32>
    %130 = arith.addf %126, %129 : vector<32x128xf32>
    %131 = vector.extract_strided_slice %116 {offsets = [96, 0], sizes = [32, 128], strides = [1, 1]} : vector<288x128xbf16> to vector<32x128xbf16>
    %132 = vector.extract_strided_slice %117 {offsets = [384, 0], sizes = [128, 128], strides = [1, 1]} : vector<1152x128xbf16> to vector<128x128xbf16>
    %cst_51 = arith.constant dense<0.000000e+00> : vector<32x128xf32>
    %133 = tpu.matmul %131, %132, %cst_51 {dimension_numbers = #tpu.dot_dimension_numbers<[1], [0], [0], [1], [0, 0, 1, 1], [], []>} : vector<32x128xbf16>, vector<128x128xbf16>, vector<32x128xf32> -> vector<32x128xf32>
    %134 = arith.addf %130, %133 : vector<32x128xf32>
    %135 = vector.extract_strided_slice %116 {offsets = [128, 0], sizes = [32, 128], strides = [1, 1]} : vector<288x128xbf16> to vector<32x128xbf16>
    %136 = vector.extract_strided_slice %117 {offsets = [512, 0], sizes = [128, 128], strides = [1, 1]} : vector<1152x128xbf16> to vector<128x128xbf16>
    %cst_52 = arith.constant dense<0.000000e+00> : vector<32x128xf32>
    %137 = tpu.matmul %135, %136, %cst_52 {dimension_numbers = #tpu.dot_dimension_numbers<[1], [0], [0], [1], [0, 0, 1, 1], [], []>} : vector<32x128xbf16>, vector<128x128xbf16>, vector<32x128xf32> -> vector<32x128xf32>
    %138 = arith.addf %134, %137 : vector<32x128xf32>
    %139 = vector.extract_strided_slice %116 {offsets = [160, 0], sizes = [32, 128], strides = [1, 1]} : vector<288x128xbf16> to vector<32x128xbf16>
    %140 = vector.extract_strided_slice %117 {offsets = [640, 0], sizes = [128, 128], strides = [1, 1]} : vector<1152x128xbf16> to vector<128x128xbf16>
    %cst_53 = arith.constant dense<0.000000e+00> : vector<32x128xf32>
    %141 = tpu.matmul %139, %140, %cst_53 {dimension_numbers = #tpu.dot_dimension_numbers<[1], [0], [0], [1], [0, 0, 1, 1], [], []>} : vector<32x128xbf16>, vector<128x128xbf16>, vector<32x128xf32> -> vector<32x128xf32>
    %142 = arith.addf %138, %141 : vector<32x128xf32>
    %143 = vector.extract_strided_slice %116 {offsets = [192, 0], sizes = [32, 128], strides = [1, 1]} : vector<288x128xbf16> to vector<32x128xbf16>
    %144 = vector.extract_strided_slice %117 {offsets = [768, 0], sizes = [128, 128], strides = [1, 1]} : vector<1152x128xbf16> to vector<128x128xbf16>
    %cst_54 = arith.constant dense<0.000000e+00> : vector<32x128xf32>
    %145 = tpu.matmul %143, %144, %cst_54 {dimension_numbers = #tpu.dot_dimension_numbers<[1], [0], [0], [1], [0, 0, 1, 1], [], []>} : vector<32x128xbf16>, vector<128x128xbf16>, vector<32x128xf32> -> vector<32x128xf32>
    %146 = arith.addf %142, %145 : vector<32x128xf32>
    %147 = vector.extract_strided_slice %116 {offsets = [224, 0], sizes = [32, 128], strides = [1, 1]} : vector<288x128xbf16> to vector<32x128xbf16>
    %148 = vector.extract_strided_slice %117 {offsets = [896, 0], sizes = [128, 128], strides = [1, 1]} : vector<1152x128xbf16> to vector<128x128xbf16>
    %cst_55 = arith.constant dense<0.000000e+00> : vector<32x128xf32>
    %149 = tpu.matmul %147, %148, %cst_55 {dimension_numbers = #tpu.dot_dimension_numbers<[1], [0], [0], [1], [0, 0, 1, 1], [], []>} : vector<32x128xbf16>, vector<128x128xbf16>, vector<32x128xf32> -> vector<32x128xf32>
    %150 = arith.addf %146, %149 : vector<32x128xf32>
    %151 = vector.extract_strided_slice %116 {offsets = [256, 0], sizes = [32, 128], strides = [1, 1]} : vector<288x128xbf16> to vector<32x128xbf16>
    %152 = vector.extract_strided_slice %117 {offsets = [1024, 0], sizes = [128, 128], strides = [1, 1]} : vector<1152x128xbf16> to vector<128x128xbf16>
    %cst_56 = arith.constant dense<0.000000e+00> : vector<32x128xf32>
    %153 = tpu.matmul %151, %152, %cst_56 {dimension_numbers = #tpu.dot_dimension_numbers<[1], [0], [0], [1], [0, 0, 1, 1], [], []>} : vector<32x128xbf16>, vector<128x128xbf16>, vector<32x128xf32> -> vector<32x128xf32>
    %154 = arith.addf %150, %153 : vector<32x128xf32>
    %c0_57 = arith.constant 0 : index
    %c0_58 = arith.constant 0 : index
    %155 = vector.load %arg10[%c0_57, %c0_58] : memref<1x128xf32, #tpu.memory_space<vmem>>, vector<1x128xf32>
    %156 = vector.broadcast %155 : vector<1x128xf32> to vector<32x128xf32>
    %157 = arith.addf %154, %156 : vector<32x128xf32>
    %c0_59 = arith.constant 0 : index
    %c0_60 = arith.constant 0 : index
    %158 = vector.load %arg11[%c0_59, %c0_60] : memref<32x128xf32, #tpu.memory_space<vmem>>, vector<32x128xf32>
    tpu.vector_store %arg11[%c0_59, %c0_60], %157 {strides = array<i32>} : memref<32x128xf32, #tpu.memory_space<vmem>>, vector<32x128xf32>,
    return
  }
}

</mosaic_0001>

<bundles_post_ra>
// kernel: tpu_custom_call.1
= control target key start
LH: loop header
LB: loop body
LE: loop exit
PB: predicated region body
PF: predicated region fallthrough
CT: control target
= control target key end

     0   :  { %16 = vsyncpa [#allocation3], 0  ;;  %s6167_s0 = inlined_call_operand.vmem [shape: bf16[128,48], index: 0, kind: input, shape index: {}]   ;;  %s6168_s1 = inlined_call_operand.hbm [shape: bf16[48,64], index: 1, kind: input, shape index: {}]   ;;  %s6169_s2 = inlined_call_operand.vmem [shape: f32[1,64], index: 2, kind: input, shape index: {}]   ;;  %s6170_s3 = inlined_call_operand.vmem [shape: bf16[512,128], index: 3, kind: input, shape index: {}]   ;;  %s6171_s4 = inlined_call_operand.hbm [shape: bf16[1024,128], index: 4, kind: input, shape index: {}]   ;;  %s6172_s5 = inlined_call_operand.vmem [shape: f32[1,128], index: 5, kind: input, shape index: {}]   ;;  %s6173_s6 = inlined_call_operand.hbm [shape: f32[1,128], index: 6, kind: input, shape index: {}]   ;;  %s6174_s7 = inlined_call_operand.hbm [shape: f32[1,128], index: 7, kind: input, shape index: {}]   ;;  %s6175_s8 = inlined_call_operand.vmem [shape: bf16[288,32], index: 8, kind: input, shape index: {}]   ;;  %s6176_s9 = inlined_call_operand.hbm [shape: bf16[1152,128], index: 9, kind: input, shape index: {}]   ;;  %s6177_s10 = inlined_call_operand.vmem [shape: f32[1,128], index: 10, kind: input, shape index: {}]   ;;  %s6178_s11 = inlined_call_operand.hbm [shape: f32[32,128], index: 11, kind: output, shape index: {}]  }
   0x1   :  { %17 = vsyncpa [#allocation6], 0 }
   0x2   :  { %18 = vsyncpa [#allocation9], 0 }
   0x3   :  { %19 = vsyncpa [#allocation4], 0  ;;  %s5422_s17 = smov [#allocation5]   ;;  %s5423_s19 = smov [#allocation8]  }
   0x4   :  { %s43_s18 = sshll.u32 %s5422_s17, 4  ;;  %s68_s20 = sshll.u32 %s5423_s19, 4  ;;  %s44_s18 = int_to_ptr.vmem [resolvable:$true] %s43_s18  ;;  %s5492_s20 = int_to_ptr.vmem [resolvable:$true] %s68_s20 }
   0x5   :  { %s5282_s23 = scalar_lea.hbm %s6171_s4, 8192 }
   0x6   :  { %p5283_p0 = scmp.ne.s32.totalorder %s6171_s4, %s5282_s23  ;;  %p5286_p1 = scmp.lt.u32.totalorder %s5282_s23, %s6171_s4 }
   0x8   :  { %p5288_p2 = pnand %p5286_p1, %p5283_p0 }
   0xa   :  { %5291 = shalt.err (!%p5288_p2)
}
   0xb   :  { %s5292_s28 = scalar_lea.vmem %s44_s18, 8192  ;;  %p5297_p4 = scmp.lt.s32.totalorder %s44_s18, %s44_s18 }
   0xc   :  { %p5293_p3 = scmp.ne.s32.totalorder %s44_s18, %s5292_s28  ;;  %p5298_p5 = scmp.lt.s32.totalorder %s5292_s28, %s5292_s28 }
   0xe   :  { %p5299_p6 = por %p5298_p5, %p5297_p4 }
  0x10   :  { %p5300_p7 = pnand %p5299_p6, %p5293_p3 }
  0x12   :  { %5303 = shalt.err (!%p5300_p7)
}
  0x13   :  { %s5424_s29 = smov 64   ;;  %s5425_s30 = smov 4  }
  0x14   :  { %49 = dma.hbm_to_vmem [thread:$0]  %s6171_s4, 8192, %s44_s18, [#allocation6], %s5424_s29, %s5424_s29, %s5425_s30  }
  0x15   :  { %s5304_s16 = scalar_lea.hbm %s6174_s7, 16 }
  0x16   :  { %p5305_p8 = scmp.ne.s32.totalorder %s6174_s7, %s5304_s16  ;;  %p5308_p9 = scmp.lt.u32.totalorder %s5304_s16, %s6174_s7 }
  0x18   :  { %p5310_p10 = pnand %p5308_p9, %p5305_p8 }
  0x1a   :  { %5313 = shalt.err (!%p5310_p10)
}
  0x1b   :  { %s5314_s23 = scalar_lea.vmem %s5492_s20, 16  ;;  %s5318_s4 = scalar_lea.vmem %s5492_s20, 32 }
  0x1c   :  { %p5315_p11 = scmp.ne.s32.totalorder %s5492_s20, %s5314_s23  ;;  %p5319_p12 = scmp.lt.s32.totalorder %s5492_s20, %s5492_s20 }
  0x1d   :  { %p5320_p13 = scmp.lt.s32.totalorder %s5318_s4, %s5314_s23 }
  0x1f   :  { %p5321_p0 = por %p5320_p13, %p5319_p12 }
  0x21   :  { %p5322_p1 = pnand %p5321_p0, %p5315_p11 }
  0x23   :  { %5325 = shalt.err (!%p5322_p1)
}
  0x24   :  { %71 = dma.hbm_to_vmem [thread:$0]  %s6174_s7, 16, %s5492_s20, [#allocation9]  }
  0x25   :  { %s5426_s25 = smov [#allocation2]   ;;  %s5427_s27 = smov [#allocation7]  }
  0x26   :  { %s27_s26 = sshll.u32 %s5426_s25, 4  ;;  %s58_s28 = sshll.u32 %s5427_s27, 4  ;;  %s28_s26 = int_to_ptr.vmem [resolvable:$true] %s27_s26  ;;  %s59_s28 = int_to_ptr.vmem [resolvable:$true] %s58_s28 }
  0x27   :  { %s5326_s14 = scalar_lea.hbm %s6168_s1, 384 }
  0x28   :  { %p5327_p2 = scmp.ne.s32.totalorder %s6168_s1, %s5326_s14  ;;  %p5330_p3 = scmp.lt.u32.totalorder %s5326_s14, %s6168_s1 }
  0x2a   :  { %p5332_p4 = pnand %p5330_p3, %p5327_p2 }
  0x2c   :  { %5335 = shalt.err (!%p5332_p4)
}
  0x2d   :  { %s5336_s7 = scalar_lea.vmem %s28_s26, 384  ;;  %p5341_p6 = scmp.lt.s32.totalorder %s28_s26, %s28_s26 }
  0x2e   :  { %p5337_p5 = scmp.ne.s32.totalorder %s28_s26, %s5336_s7  ;;  %p5342_p7 = scmp.lt.s32.totalorder %s5336_s7, %s5336_s7 }
  0x30   :  { %p5343_p8 = por %p5342_p7, %p5341_p6 }
  0x32   :  { %p5344_p9 = pnand %p5343_p8, %p5337_p5 }
  0x34   :  { %5347 = shalt.err (!%p5344_p9)
}
  0x35   :  { %33 = dma.hbm_to_vmem [thread:$0]  %s6168_s1, 384, %s28_s26, [#allocation3], %s5424_s29, %s5424_s29, %s5425_s30  }
  0x36   :  { %s5348_s4 = scalar_lea.hbm %s6173_s6, 16 }
  0x37   :  { %p5349_p10 = scmp.ne.s32.totalorder %s6173_s6, %s5348_s4  ;;  %p5352_p11 = scmp.lt.u32.totalorder %s5348_s4, %s6173_s6 }
  0x39   :  { %p5354_p12 = pnand %p5352_p11, %p5349_p10 }
  0x3b   :  { %5357 = shalt.err (!%p5354_p12)
}
  0x3c   :  { %s5358_s12 = scalar_lea.vmem %s59_s28, 16  ;;  %s5362_s13 = scalar_lea.vmem %s59_s28, 32 }
  0x3d   :  { %p5359_p13 = scmp.ne.s32.totalorder %s59_s28, %s5358_s12  ;;  %p5363_p0 = scmp.lt.s32.totalorder %s59_s28, %s59_s28 }
  0x3e   :  { %p5364_p1 = scmp.lt.s32.totalorder %s5362_s13, %s5358_s12 }
  0x40   :  { %p5365_p2 = por %p5364_p1, %p5363_p0 }
  0x42   :  { %p5366_p3 = pnand %p5365_p2, %p5359_p13 }
  0x44   :  { %5369 = shalt.err (!%p5366_p3)
}
  0x45   :  { %61 = dma.hbm_to_vmem [thread:$0]  %s6173_s6, 16, %s59_s28, [#allocation6]  }
  0x46   :  { %s5428_s14 = smov [#allocation10]   ;;  %s5370_s19 = scalar_lea.hbm %s6176_s9, 9216 }
  0x47   :  { %s79_s15 = sshll.u32 %s5428_s14, 4  ;;  %p5371_p4 = scmp.ne.s32.totalorder %s6176_s9, %s5370_s19  ;;  %s80_s15 = int_to_ptr.vmem [resolvable:$true] %s79_s15 }
  0x48   :  { %p5374_p5 = scmp.lt.u32.totalorder %s5370_s19, %s6176_s9 }
  0x4a   :  { %p5376_p6 = pnand %p5374_p5, %p5371_p4 }
  0x4c   :  { %5379 = shalt.err (!%p5376_p6)
}
  0x4d   :  { %s5380_s23 = scalar_lea.vmem %s80_s15, 9216  ;;  %p5385_p8 = scmp.lt.s32.totalorder %s80_s15, %s80_s15 }
  0x4e   :  { %p5381_p7 = scmp.ne.s32.totalorder %s80_s15, %s5380_s23  ;;  %p5386_p9 = scmp.lt.s32.totalorder %s5380_s23, %s5380_s23 }
  0x50   :  { %p5387_p10 = por %p5386_p9, %p5385_p8 }
  0x52   :  { %p5388_p11 = pnand %p5387_p10, %p5381_p7 }
  0x54   :  { %5391 = shalt.err (!%p5388_p11)
}
  0x55   :  { %85 = dma.hbm_to_vmem [thread:$0]  %s6176_s9, 9216, %s80_s15, [#allocation9], %s5424_s29, %s5424_s29, %s5425_s30  }
  0x56   :  { %5414 = dma.done.wait [#allocation3], 384  }
  0x57   :  { %5415 = vsyncadd [#allocation3], 4294966912 }
  0x58   :  { %5416 = dma.done.wait [#allocation6], 8208  }
  0x59   :  { %5417 = vsyncadd [#allocation6], 4294959088 }
  0x5a   :  { %5418 = dma.done.wait [#allocation9], 9232  }
  0x5b   :  { %5419 = vsyncadd [#allocation9], 4294958064  ;;  %v5083_v0 = vld [vmem:[#allocation2] sm:$0xff]   ;;  %v5084_v1 = vld [vmem:[#allocation2 + $0x8] sm:$0xff]   ;;  %vm191_vm0 = vcmask 392192   ;;  %s5429_s15 = smov [#allocation11]  }
  0x5c   :  { %4451 = vmatprep.subr.bf16.mxu0 %v5083_v0  ;;  %v5086_v2 = vld [vmem:[%s6167_s0] sm:$0xff]   ;;  %v5087_v4 = vld [vmem:[%s6167_s0 + $0x8] sm:$0xff]   ;;  %v5088_v5 = vld [vmem:[%s6167_s0 + $0x10] sm:$0xff]   ;;  %s3920_s16 = sshll.u32 %s5429_s15, 4  ;;  %s3921_s16 = int_to_ptr.vmem [resolvable:$true] %s3920_s16 }
  0x5d   :  { %4452 = vmatpush3.bf16.msra.mxu0 %v5083_v0  ;;  %v5085_v3 = vld [vmem:[#allocation2 + $0x10] sm:$0xff]   ;;  %4457 = vmatprep.mubr.msk.bf16.mxu0 %vm191_vm0, %v5086_v2  ;;  %v5089_v6 = vld [vmem:[%s6167_s0 + $0x18] sm:$0xff]   ;;  %v5091_v8 = vld [vmem:[%s6167_s0 + $0x28] sm:$0xff]   ;;  %s5392_s17 = scalar_lea.vmem %s3921_s16, 512  ;;  %p5397_p13 = scmp.lt.s32.totalorder %s3921_s16, %s3921_s16 }
  0x5e   :  { %4453 = vmatprep.subr.bf16.mxu0 %v5084_v1  ;;  %v5090_v7 = vld [vmem:[%s6167_s0 + $0x20] sm:$0xff]   ;;  %v5092_v9 = vld [vmem:[%s6167_s0 + $0x30] sm:$0xff]   ;;  %v5093_v10 = vld [vmem:[%s6167_s0 + $0x38] sm:$0xff]   ;;  %p5393_p12 = scmp.ne.s32.totalorder %s3921_s16, %s5392_s17  ;;  %p5398_p0 = scmp.lt.s32.totalorder %s5392_s17, %s5392_s17 }
  0x5f   :  { %v5094_v11 = vld [vmem:[%s6170_s3] sm:$0xff]  }
  0x60   :  { %v5607_v12 = vld [vmem:[%s6169_s2] ss:$0 sm:$0xff]  ;;  %p5399_p1 = por %p5398_p0, %p5397_p13 }
  0x61   :  { %4454 = vmatpush3.bf16.msra.mxu0 %v5084_v1  ;;  %v5120_v21 = vld [vmem:[%s6170_s3 + $0xc0] sm:$0xff]  }
  0x62   :  { %4455 = vmatprep.subr.bf16.mxu0 %v5085_v3  ;;  %4537 = vmatprep.mubr.bf16.mxu1 %v5120_v21  ;;  %p5400_p2 = pnand %p5399_p1, %p5393_p12 }
  0x65   :  { %4456 = vmatpush3.bf16.msra.mxu0 %v5085_v3 }
  0x68   :  { %4458 = vmatmul.mubr.msk.bf16.vlgmr.msra.gmra.mrb[0].mxu0 %vm191_vm0, %v5087_v4 }
  0x69   :  { %4461 = vmatprep.mubr.msk.bf16.mxu0 %vm191_vm0, %v5088_v5 }
  0x70   :  { %4462 = vmatmul.mubr.msk.bf16.gmra.mrb[4].mxu0 %vm191_vm0, %v5089_v6 }
  0x71   :  { %4465 = vmatprep.mubr.msk.bf16.mxu0 %vm191_vm0, %v5090_v7 }
  0x78   :  { %4466 = vmatmul.mubr.msk.bf16.gmra.mrb[8].mxu0 %vm191_vm0, %v5091_v8 }
  0x79   :  { %4469 = vmatprep.mubr.msk.bf16.mxu0 %vm191_vm0, %v5092_v9 }
  0x80   :  { %4470 = vmatmul.mubr.msk.bf16.gmra.mrb[12].mxu0 %vm191_vm0, %v5093_v10 }
  0x81   :  { %4489 = vmatprep.mubr.bf16.mxu0 %v5094_v11 }
 0x13b   :  { %v4459_v13 = vpop.f32.mrb[0].mxu0 }
 0x13c   :  { %v259_v14 = vadd.f32 %v4459_v13, %v5607_v12  ;;  %v250_v15 = vpop.f32.mrb[1].mxu0 }
 0x13d   :  { %v251_v16 = vadd.f32 %v5607_v12, %v250_v15  ;;  %v4460_v17 = vpop.f32.mrb[2].mxu0 }
 0x13e   :  { %v331_v18 = vmul.f32 0.2, %v259_v14  ;;  %v262_v19 = vadd.f32 %v4460_v17, %v5607_v12  ;;  %v253_v20 = vpop.f32.mrb[3].mxu0  ;;  %vm315_vm1 = vcmp.ge.f32.partialorder %v259_v14, 0.0 }
 0x13f   :  { %v329_v22 = vmul.f32 0.2, %v251_v16  ;;  %v254_v23 = vadd.f32 %v5607_v12, %v253_v20  ;;  %vm313_vm2 = vcmp.ge.f32.partialorder %v251_v16, 0.0 }
 0x140   :  { %vm316_vm3 = vcmp.ge.f32.partialorder %v262_v19, 0.0  ;;  %v332_v24 = vmul.f32 0.2, %v262_v19  ;;  %v347_v26 = vsel %vm315_vm1, %v259_v14, %v331_v18  ;;  %vm1098_vm1 = vcmask 523264  }
 0x141   :  { %vm314_vm4 = vcmp.ge.f32.partialorder %v254_v23, 0.0  ;;  %v330_v25 = vmul.f32 0.2, %v254_v23  ;;  %v345_v28 = vsel %vm313_vm2, %v251_v16, %v329_v22  ;;  %vm2605_vm2 = vcmask 261120  }
 0x142   :  { %v348_v27 = vsel %vm316_vm3, %v262_v19, %v332_v24  ;;  %v5121_v24 = vld [vmem:[%s6170_s3 + $0xc8] sm:$0xff]  }
 0x143   :  { %v426_v29 = vpack.c.bf16 %v348_v27, %v347_v26  ;;  %v346_v30 = vsel %vm314_vm4, %v254_v23, %v330_v25  ;;  %v4463_v31 = vpop.f32.mrb[4].mxu0  ;;  %v5095_v23 = vld [vmem:[%s6170_s3 + $0x8] sm:$0xff]   ;;  %v5096_v25 = vld [vmem:[%s6170_s3 + $0x10] sm:$0xff]   ;;  %v5122_v27 = vld [vmem:[#allocation5 + $0x30] sm:$0xff]  }
 0x144   :  { %v425_v32 = vpack.c.bf16 %v346_v30, %v345_v28  ;;  %v275_v33 = vadd.f32 %v4463_v31, %v5607_v12  ;;  %v266_v34 = vpop.f32.mrb[5].mxu0  ;;  %v5117_v26 = vld [vmem:[#allocation5 + $0x28] sm:$0xff]   ;;  %v5097_v28 = vld [vmem:[%s6170_s3 + $0x18] sm:$0xff]   ;;  %v5099_v30 = vld [vmem:[%s6170_s3 + $0x28] sm:$0xff]  }
 0x145   :  { %v267_v35 = vadd.f32 %v5607_v12, %v266_v34  ;;  %v4464_v36 = vpop.f32.mrb[6].mxu0  ;;  %v5100_v31 = vld [vmem:[%s6170_s3 + $0x30] sm:$0xff]   ;;  %v5103_v34 = vld [vmem:[%s6170_s3 + $0x48] sm:$0xff]  }
 0x146   :  { %v335_v37 = vmul.f32 0.2, %v275_v33  ;;  %v278_v38 = vadd.f32 %v4464_v36, %v5607_v12  ;;  %v269_v39 = vpop.f32.mrb[7].mxu0  ;;  %4473 = vmatprep.subr.bf16.mxu0 %v425_v32  ;;  %4965 = vmatprep.subr.bf16.mxu1 %v425_v32  ;;  %vm319_vm5 = vcmp.ge.f32.partialorder %v275_v33, 0.0  ;;  %v5105_v36 = vld [vmem:[%s6170_s3 + $0x58] sm:$0xff]  }
 0x147   :  { %v333_v40 = vmul.f32 0.2, %v267_v35  ;;  %v270_v41 = vadd.f32 %v5607_v12, %v269_v39  ;;  %4474 = vmatpush3.bf16.msra.mxu0 %v425_v32  ;;  %4973 = vmatpush3.bf16.msra.mxu1 %v425_v32  ;;  %vm317_vm6 = vcmp.ge.f32.partialorder %v267_v35, 0.0  ;;  %v5101_v32 = vld [vmem:[%s6170_s3 + $0x38] sm:$0xff]   ;;  %v5108_v39 = vld [vmem:[%s6170_s3 + $0x70] sm:$0xff]  }
 0x148   :  { %vm320_vm7 = vcmp.ge.f32.partialorder %v278_v38, 0.0  ;;  %v336_v42 = vmul.f32 0.2, %v278_v38  ;;  %4475 = vmatprep.subr.bf16.mxu0 %v426_v29  ;;  %4966 = vmatprep.subr.bf16.mxu1 %v426_v29  ;;  %v351_v44 = vsel %vm319_vm5, %v275_v33, %v335_v37  ;;  %v5102_v33 = vld [vmem:[%s6170_s3 + $0x40] sm:$0xff]  }
 0x149   :  { %vm318_vm8 = vcmp.ge.f32.partialorder %v270_v41, 0.0  ;;  %v334_v43 = vmul.f32 0.2, %v270_v41  ;;  %v349_v46 = vsel %vm317_vm6, %v267_v35, %v333_v40  ;;  %v5104_v35 = vld [vmem:[%s6170_s3 + $0x50] sm:$0xff]   ;;  %v5106_v37 = vld [vmem:[%s6170_s3 + $0x60] sm:$0xff]   ;;  %v5109_v40 = vld [vmem:[%s6170_s3 + $0x78] sm:$0xff]  }
 0x14a   :  { %v352_v45 = vsel %vm320_vm7, %v278_v38, %v336_v42  ;;  %v5107_v38 = vld [vmem:[%s6170_s3 + $0x68] sm:$0xff]  }
 0x14b   :  { %v428_v47 = vpack.c.bf16 %v352_v45, %v351_v44  ;;  %v350_v48 = vsel %vm318_vm8, %v270_v41, %v334_v43  ;;  %v4467_v49 = vpop.f32.mrb[8].mxu0  ;;  %4476 = vmatpush3.bf16.msra.mxu0 %v426_v29  ;;  %4974 = vmatpush3.bf16.msra.mxu1 %v426_v29  ;;  %v5098_v29 = vld [vmem:[%s6170_s3 + $0x20] sm:$0xff]   ;;  %v5111_v42 = vld [vmem:[%s6170_s3 + $0x88] sm:$0xff]   ;;  %v5112_v43 = vld [vmem:[%s6170_s3 + $0x90] sm:$0xff]  }
 0x14c   :  { %v427_v50 = vpack.c.bf16 %v350_v48, %v349_v46  ;;  %v291_v51 = vadd.f32 %v4467_v49, %v5607_v12  ;;  %v282_v52 = vpop.f32.mrb[9].mxu0  ;;  %v5110_v41 = vld [vmem:[%s6170_s3 + $0x80] sm:$0xff]   ;;  %v5113_v44 = vld [vmem:[%s6170_s3 + $0x98] sm:$0xff]   ;;  %v5116_v46 = vld [vmem:[%s6170_s3 + $0xa8] sm:$0xff]  }
 0x14d   :  { %v283_v53 = vadd.f32 %v5607_v12, %v282_v52  ;;  %v4468_v54 = vpop.f32.mrb[10].mxu0  ;;  %v5115_v45 = vld [vmem:[%s6170_s3 + $0xa0] sm:$0xff]   ;;  %v5123_v48 = vld [vmem:[%s6170_s3 + $0xd0] sm:$0xff]   ;;  %v5124_v49 = vld [vmem:[%s6170_s3 + $0xd8] sm:$0xff]  }
 0x14e   :  { %v339_v55 = vmul.f32 0.2, %v291_v51  ;;  %v294_v56 = vadd.f32 %v4468_v54, %v5607_v12  ;;  %v285_v57 = vpop.f32.mrb[11].mxu0  ;;  %4477 = vmatprep.subr.bf16.mxu0 %v427_v50  ;;  %4967 = vmatprep.subr.bf16.mxu1 %v427_v50  ;;  %vm323_vm9 = vcmp.ge.f32.partialorder %v291_v51, 0.0  ;;  %v5126_v52 = vld [vmem:[#allocation5] sm:$0xff]  }
 0x14f   :  { %v337_v58 = vmul.f32 0.2, %v283_v53  ;;  %v286_v59 = vadd.f32 %v5607_v12, %v285_v57  ;;  %4478 = vmatpush3.bf16.msra.mxu0 %v427_v50  ;;  %4975 = vmatpush3.bf16.msra.mxu1 %v427_v50  ;;  %vm321_vm10 = vcmp.ge.f32.partialorder %v283_v53, 0.0  ;;  %v5119_v50 = vld [vmem:[%s6170_s3 + $0xb8] sm:$0xff]   ;;  %v5128_v54 = vld [vmem:[%s6170_s3 + $0xe8] sm:$0xff]  }
 0x150   :  { %vm324_vm11 = vcmp.ge.f32.partialorder %v294_v56, 0.0  ;;  %v340_v60 = vmul.f32 0.2, %v294_v56  ;;  %4479 = vmatprep.subr.bf16.mxu0 %v428_v47  ;;  %4968 = vmatprep.subr.bf16.mxu1 %v428_v47  ;;  %v355_v62 = vsel %vm323_vm9, %v291_v51, %v339_v55  ;;  %v5125_v51 = vld [vmem:[#allocation5 + $0x38] sm:$0xff]   ;;  %v5133_v55 = vld [vmem:[%s6170_s3 + $0xf0] sm:$0xff]  }
 0x151   :  { %vm322_vm12 = vcmp.ge.f32.partialorder %v286_v59, 0.0  ;;  %v338_v61 = vmul.f32 0.2, %v286_v59  ;;  %v353_v0 = vsel %vm321_vm10, %v283_v53, %v337_v58  ;;  %v5127_v53 = vld [vmem:[%s6170_s3 + $0xe0] sm:$0xff]  }
 0x152   :  { %v356_v63 = vsel %vm324_vm11, %v294_v56, %v340_v60  ;;  %v5134_v56 = vld [vmem:[%s6170_s3 + $0xf8] sm:$0xff]  }
 0x153   :  { %v430_v1 = vpack.c.bf16 %v356_v63, %v355_v62  ;;  %v354_v2 = vsel %vm322_vm12, %v286_v59, %v338_v61  ;;  %v4471_v3 = vpop.f32.mrb[12].mxu0  ;;  %4480 = vmatpush3.bf16.msra.mxu0 %v428_v47  ;;  %4976 = vmatpush3.bf16.msra.mxu1 %v428_v47  ;;  %v5118_v47 = vld [vmem:[%s6170_s3 + $0xb0] sm:$0xff]  }
 0x154   :  { %v429_v4 = vpack.c.bf16 %v354_v2, %v353_v0  ;;  %v307_v5 = vadd.f32 %v4471_v3, %v5607_v12  ;;  %v298_v6 = vpop.f32.mrb[13].mxu0 }
 0x155   :  { %v299_v7 = vadd.f32 %v5607_v12, %v298_v6  ;;  %v4472_v8 = vpop.f32.mrb[14].mxu0 }
 0x156   :  { %v343_v9 = vmul.f32 0.2, %v307_v5  ;;  %v310_v10 = vadd.f32 %v4472_v8, %v5607_v12  ;;  %v301_v11 = vpop.f32.mrb[15].mxu0  ;;  %4481 = vmatprep.subr.bf16.mxu0 %v429_v4  ;;  %4969 = vmatprep.subr.bf16.mxu1 %v429_v4  ;;  %vm327_vm13 = vcmp.ge.f32.partialorder %v307_v5, 0.0 }
 0x157   :  { %v341_v13 = vmul.f32 0.2, %v299_v7  ;;  %v302_v14 = vadd.f32 %v5607_v12, %v301_v11  ;;  %4482 = vmatpush3.bf16.msra.mxu0 %v429_v4  ;;  %4977 = vmatpush3.bf16.msra.mxu1 %v429_v4  ;;  %vm325_vm14 = vcmp.ge.f32.partialorder %v299_v7, 0.0  ;;  %v5114_v12 = vld [vmem:[#allocation5 + $0x20] sm:$0xff]  }
 0x158   :  { %vm328_vm15 = vcmp.ge.f32.partialorder %v310_v10, 0.0  ;;  %v344_v15 = vmul.f32 0.2, %v310_v10  ;;  %4483 = vmatprep.subr.bf16.mxu0 %v430_v1  ;;  %4970 = vmatprep.subr.bf16.mxu1 %v430_v1  ;;  %v359_v17 = vsel %vm327_vm13, %v307_v5, %v343_v9  ;;  %v5129_v5 = vld [vmem:[#allocation5 + $0x8] sm:$0xff]  }
 0x159   :  { %vm326_vm0 = vcmp.ge.f32.partialorder %v302_v14, 0.0  ;;  %v342_v16 = vmul.f32 0.2, %v302_v14  ;;  %v357_v19 = vsel %vm325_vm14, %v299_v7, %v341_v13  ;;  %v5130_v7 = vld [vmem:[#allocation5 + $0x10] sm:$0xff]  }
 0x15a   :  { %v360_v18 = vsel %vm328_vm15, %v310_v10, %v344_v15 }
 0x15b   :  { %v432_v20 = vpack.c.bf16 %v360_v18, %v359_v17  ;;  %v358_v21 = vsel %vm326_vm0, %v302_v14, %v342_v16  ;;  %4484 = vmatpush3.bf16.msra.mxu0 %v430_v1  ;;  %4978 = vmatpush3.bf16.msra.mxu1 %v430_v1  ;;  %v5131_v14 = vld [vmem:[#allocation5 + $0x18] sm:$0xff]   ;;  %v5132_v16 = vld [vmem:[#allocation5 + $0x40] sm:$0xff]  }
 0x15c   :  { %v431_v22 = vpack.c.bf16 %v358_v21, %v357_v19 }
 0x15e   :  { %4485 = vmatprep.subr.bf16.mxu0 %v431_v22  ;;  %4971 = vmatprep.subr.bf16.mxu1 %v431_v22 }
 0x15f   :  { %4486 = vmatpush3.bf16.msra.mxu0 %v431_v22  ;;  %4979 = vmatpush3.bf16.msra.mxu1 %v431_v22  ;;  %v5135_v22 = vld [vmem:[#allocation5 + $0x48] sm:$0xff]  }
 0x160   :  { %4487 = vmatprep.subr.bf16.mxu0 %v432_v20  ;;  %4972 = vmatprep.subr.bf16.mxu1 %v432_v20 }
 0x163   :  { %4488 = vmatpush3.bf16.msra.mxu0 %v432_v20  ;;  %4980 = vmatpush3.bf16.msra.mxu1 %v432_v20 }
 0x164   :  { %4553 = vmatprep.subr.bf16.mxu0 %v5114_v12 }
 0x166   :  { %4490 = vmatmul.mubr.bf16.vlgmr.msra.gmra.mrb[16].mxu0 %v5095_v23  ;;  %4538 = vmatmul.mubr.bf16.vlgmr.msra.gmra.mrb[0].mxu1 %v5121_v24  ;;  %v5136_v23 = vld [vmem:[#allocation5 + $0x50] sm:$0xff]  }
 0x167   :  { %4493 = vmatprep.mubr.bf16.mxu0 %v5096_v25  ;;  %4554 = vmatpush3.bf16.msra.mxu0 %v5114_v12 }
 0x168   :  { %4555 = vmatprep.subr.bf16.mxu0 %v5117_v26  ;;  %4541 = vmatprep.mubr.bf16.mxu1 %v5123_v48 }
 0x16b   :  { %4556 = vmatpush3.bf16.msra.mxu0 %v5117_v26 }
 0x16c   :  { %4557 = vmatprep.subr.bf16.mxu0 %v5122_v27 }
 0x16e   :  { %4494 = vmatmul.mubr.bf16.gmra.mrb[20].mxu0 %v5097_v28  ;;  %4542 = vmatmul.mubr.bf16.gmra.mrb[4].mxu1 %v5124_v49 }
 0x16f   :  { %4497 = vmatprep.mubr.bf16.mxu0 %v5098_v29  ;;  %4558 = vmatpush3.bf16.msra.mxu0 %v5122_v27  ;;  %v5137_v29 = vld [vmem:[#allocation5 + $0x58] sm:$0xff]  }
 0x170   :  { %4559 = vmatprep.subr.bf16.mxu0 %v5125_v51  ;;  %4545 = vmatprep.mubr.bf16.mxu1 %v5127_v53  ;;  %v5143_v53 = vld [vmem:[#allocation5 + $0x88] sm:$0xff]  }
 0x173   :  { %4560 = vmatpush3.bf16.msra.mxu0 %v5125_v51 }
 0x174   :  { %4565 = vmatprep.subr.bf16.mxu0 %v5126_v52 }
 0x176   :  { %4498 = vmatmul.mubr.bf16.gmra.mrb[24].mxu0 %v5099_v30  ;;  %4546 = vmatmul.mubr.bf16.gmra.mrb[8].mxu1 %v5128_v54 }
 0x177   :  { %4501 = vmatprep.mubr.bf16.mxu0 %v5100_v31  ;;  %4549 = vmatprep.mubr.bf16.mxu1 %v5133_v55  ;;  %v5138_v31 = vld [vmem:[#allocation5 + $0x60] sm:$0xff]   ;;  %v5144_v55 = vld [vmem:[#allocation5 + $0x90] sm:$0xff]  }
 0x17e   :  { %4502 = vmatmul.mubr.bf16.gmra.mrb[28].mxu0 %v5101_v32  ;;  %4550 = vmatmul.mubr.bf16.gmra.mrb[12].mxu1 %v5134_v56 }
 0x17f   :  { %4505 = vmatprep.mubr.bf16.mxu0 %v5102_v33 }
 0x186   :  { %4506 = vmatmul.mubr.bf16.gmra.mrb[32].mxu0 %v5103_v34 }
 0x187   :  { %4509 = vmatprep.mubr.bf16.mxu0 %v5104_v35 }
 0x18e   :  { %4510 = vmatmul.mubr.bf16.gmra.mrb[36].mxu0 %v5105_v36 }
 0x18f   :  { %4513 = vmatprep.mubr.bf16.mxu0 %v5106_v37  ;;  %v5139_v37 = vld [vmem:[#allocation5 + $0x68] sm:$0xff]  }
 0x196   :  { %4514 = vmatmul.mubr.bf16.gmra.mrb[40].mxu0 %v5107_v38 }
 0x197   :  { %4517 = vmatprep.mubr.bf16.mxu0 %v5108_v39  ;;  %v5140_v39 = vld [vmem:[#allocation5 + $0x70] sm:$0xff]  }
 0x19e   :  { %4518 = vmatmul.mubr.bf16.gmra.mrb[44].mxu0 %v5109_v40 }
 0x19f   :  { %4521 = vmatprep.mubr.bf16.mxu0 %v5110_v41 }
 0x1a6   :  { %4522 = vmatmul.mubr.bf16.gmra.mrb[48].mxu0 %v5111_v42 }
 0x1a7   :  { %4525 = vmatprep.mubr.bf16.mxu0 %v5112_v43 }
 0x1ae   :  { %4526 = vmatmul.mubr.bf16.gmra.mrb[52].mxu0 %v5113_v44 }
 0x1af   :  { %4529 = vmatprep.mubr.bf16.mxu0 %v5115_v45  ;;  %v5141_v45 = vld [vmem:[#allocation5 + $0x78] sm:$0xff]  }
 0x1b6   :  { %4530 = vmatmul.mubr.bf16.gmra.mrb[56].mxu0 %v5116_v46 }
 0x1b7   :  { %4533 = vmatprep.mubr.bf16.mxu0 %v5118_v47  ;;  %v5142_v47 = vld [vmem:[#allocation5 + $0x80] sm:$0xff]  }
 0x1be   :  { %4534 = vmatmul.mubr.bf16.gmra.mrb[60].mxu0 %v5119_v50 }
 0x239   :  { %v4491_v57 = vpop.f32.mrb[16].mxu0 }
 0x23a   :  { %v659_v58 = vpop.f32.mrb[17].mxu0 }
 0x23b   :  { %v4492_v59 = vpop.f32.mrb[18].mxu0 }
 0x23c   :  { %v915_v60 = vpack.c.bf16 %v4492_v59, %v4491_v57  ;;  %v662_v61 = vpop.f32.mrb[19].mxu0 }
 0x23d   :  { %v914_v62 = vpack.c.bf16 %v662_v61, %v659_v58  ;;  %v5784_v61 = vpop.f32.mrb[0].mxu1 }
 0x241   :  { %v4495_v63 = vpop.f32.mrb[20].mxu0 }
 0x242   :  { %v675_v0 = vpop.f32.mrb[21].mxu0 }
 0x243   :  { %v4496_v1 = vpop.f32.mrb[22].mxu0 }
 0x244   :  { %v917_v2 = vpack.c.bf16 %v4496_v1, %v4495_v63  ;;  %v678_v3 = vpop.f32.mrb[23].mxu0  ;;  %v5786_v63 = vpop.f32.mrb[1].mxu1 }
 0x245   :  { %v916_v4 = vpack.c.bf16 %v678_v3, %v675_v0  ;;  %v5788_v0 = vpop.f32.mrb[2].mxu1 }
 0x246   :  { %v939_v1 = vpack.c.bf16 %v5788_v0, %v5784_v61  ;;  %v5794_v3 = vpop.f32.mrb[3].mxu1  ;;  %v5184_v61 = vld [vmem:[#allocation5 + $0x1d0] sm:$0xff]   ;;  %v5185_v0 = vld [vmem:[#allocation5 + $0x1d8] sm:$0xff]  }
 0x247   :  { %4561 = vmatprep.mubr.msk.bf16.mxu0 %vm1098_vm1, %v916_v4  ;;  %v5146_v4 = vld [vmem:[#allocation5 + $0xa0] sm:$0xff]  }
 0x248   :  { %4562 = vmatmul.mubr.msk.bf16.vlgmr.msra.gmra.mrb[64].mxu0 %vm1098_vm1, %v917_v2 }
 0x249   :  { %4566 = vmatpush3.bf16.msra.mxu0 %v5126_v52  ;;  %4573 = vmatprep.mubr.msk.bf16.mxu0 %vm1098_vm1, %v914_v62  ;;  %v4499_v6 = vpop.f32.mrb[24].mxu0  ;;  %v5145_v62 = vld [vmem:[#allocation5 + $0x98] sm:$0xff]  }
 0x24a   :  { %4567 = vmatprep.subr.bf16.mxu0 %v5129_v5  ;;  %v691_v8 = vpop.f32.mrb[25].mxu0 }
 0x24b   :  { %v4500_v9 = vpop.f32.mrb[26].mxu0 }
 0x24c   :  { %v919_v10 = vpack.c.bf16 %v4500_v9, %v4499_v6  ;;  %v694_v11 = vpop.f32.mrb[27].mxu0  ;;  %v938_v6 = vpack.c.bf16 %v5794_v3, %v5786_v63  ;;  %v5180_v63 = vld [vmem:[#allocation5 + $0x1b0] sm:$0xff]   ;;  %v5181_v3 = vld [vmem:[#allocation5 + $0x1b8] sm:$0xff]  }
 0x24d   :  { %4568 = vmatpush3.bf16.msra.mxu0 %v5129_v5  ;;  %v918_v13 = vpack.c.bf16 %v694_v11, %v691_v8  ;;  %v5147_v11 = vld [vmem:[#allocation5 + $0xa8] sm:$0xff]  }
 0x24e   :  { %4569 = vmatprep.subr.bf16.mxu0 %v5130_v7 }
 0x251   :  { %4570 = vmatpush3.bf16.msra.mxu0 %v5130_v7  ;;  %v5721_v15 = vpop.f32.mrb[28].mxu0 }
 0x252   :  { %4571 = vmatprep.subr.bf16.mxu0 %v5131_v14  ;;  %v707_v17 = vpop.f32.mrb[29].mxu0 }
 0x253   :  { %v4504_v18 = vpop.f32.mrb[30].mxu0 }
 0x254   :  { %v921_v19 = vpack.c.bf16 %v4504_v18, %v5721_v15  ;;  %v710_v20 = vpop.f32.mrb[31].mxu0 }
 0x255   :  { %4572 = vmatpush3.bf16.msra.mxu0 %v5131_v14  ;;  %v920_v21 = vpack.c.bf16 %v710_v20, %v707_v17  ;;  %v5148_v14 = vld [vmem:[#allocation5 + $0xb0] sm:$0xff]   ;;  %v5149_v20 = vld [vmem:[#allocation5 + $0xb8] sm:$0xff]  }
 0x256   :  { %4577 = vmatprep.subr.bf16.mxu0 %v5132_v16 }
 0x258   :  { %4574 = vmatmul.mubr.msk.bf16.vlgmr.msra.gmra.mrb[64].mxu0 %vm1098_vm1, %v915_v60 }
 0x259   :  { %4578 = vmatpush3.bf16.msra.mxu0 %v5132_v16  ;;  %4585 = vmatprep.mubr.msk.bf16.mxu0 %vm1098_vm1, %v918_v13  ;;  %v5726_v12 = vpop.f32.mrb[32].mxu0 }
 0x25a   :  { %4579 = vmatprep.subr.bf16.mxu0 %v5135_v22  ;;  %v723_v24 = vpop.f32.mrb[33].mxu0 }
 0x25b   :  { %v5728_v25 = vpop.f32.mrb[34].mxu0 }
 0x25c   :  { %v923_v26 = vpack.c.bf16 %v5728_v25, %v5726_v12  ;;  %v726_v27 = vpop.f32.mrb[35].mxu0 }
 0x25d   :  { %4580 = vmatpush3.bf16.msra.mxu0 %v5135_v22  ;;  %v922_v28 = vpack.c.bf16 %v726_v27, %v723_v24 }
 0x25e   :  { %4581 = vmatprep.subr.bf16.mxu0 %v5136_v23 }
 0x261   :  { %4582 = vmatpush3.bf16.msra.mxu0 %v5136_v23  ;;  %v5732_v30 = vpop.f32.mrb[36].mxu0 }
 0x262   :  { %4583 = vmatprep.subr.bf16.mxu0 %v5137_v29  ;;  %v5734_v32 = vpop.f32.mrb[37].mxu0 }
 0x263   :  { %v5736_v33 = vpop.f32.mrb[38].mxu0 }
 0x264   :  { %v925_v34 = vpack.c.bf16 %v5736_v33, %v5732_v30  ;;  %v5740_v35 = vpop.f32.mrb[39].mxu0  ;;  %v5154_v30 = vld [vmem:[#allocation5 + $0xe0] sm:$0xff]  }
 0x265   :  { %4584 = vmatpush3.bf16.msra.mxu0 %v5137_v29  ;;  %v924_v36 = vpack.c.bf16 %v5740_v35, %v5734_v32 }
 0x266   :  { %4589 = vmatprep.subr.bf16.mxu0 %v5138_v31 }
 0x268   :  { %4586 = vmatmul.mubr.msk.bf16.vlgmr.msra.gmra.mrb[64].mxu0 %vm1098_vm1, %v919_v10 }
 0x269   :  { %4590 = vmatpush3.bf16.msra.mxu0 %v5138_v31  ;;  %4597 = vmatprep.mubr.msk.bf16.mxu0 %vm1098_vm1, %v920_v21  ;;  %v5746_v38 = vpop.f32.mrb[40].mxu0  ;;  %v5828_v21 = vpop.f32.mrb[4].mxu1 }
 0x26a   :  { %4591 = vmatprep.subr.bf16.mxu0 %v5139_v37  ;;  %v5748_v40 = vpop.f32.mrb[41].mxu0  ;;  %v5830_v22 = vpop.f32.mrb[5].mxu1 }
 0x26b   :  { %v5750_v41 = vpop.f32.mrb[42].mxu0  ;;  %v5832_v12 = vpop.f32.mrb[6].mxu1 }
 0x26c   :  { %v927_v42 = vpack.c.bf16 %v5750_v41, %v5746_v38  ;;  %v5754_v43 = vpop.f32.mrb[43].mxu0  ;;  %v941_v24 = vpack.c.bf16 %v5832_v12, %v5828_v21  ;;  %v5838_v25 = vpop.f32.mrb[7].mxu1  ;;  %v4082_v21 = vld [vmem:[%s6172_s5] ss:$0 sm:$0xff] }
 0x26d   :  { %4592 = vmatpush3.bf16.msra.mxu0 %v5139_v37  ;;  %v926_v44 = vpack.c.bf16 %v5754_v43, %v5748_v40  ;;  %v5152_v37 = vld [vmem:[#allocation5 + $0xd0] sm:$0xff]   ;;  %v5155_v43 = vld [vmem:[#allocation5 + $0xe8] sm:$0xff]  }
 0x26e   :  { %4593 = vmatprep.subr.bf16.mxu0 %v5140_v39 }
 0x271   :  { %4594 = vmatpush3.bf16.msra.mxu0 %v5140_v39  ;;  %v5758_v46 = vpop.f32.mrb[44].mxu0  ;;  %v5153_v39 = vld [vmem:[#allocation5 + $0xd8] sm:$0xff]  }
 0x272   :  { %4595 = vmatprep.subr.bf16.mxu0 %v5141_v45  ;;  %v5760_v48 = vpop.f32.mrb[45].mxu0 }
 0x273   :  { %v5762_v49 = vpop.f32.mrb[46].mxu0 }
 0x274   :  { %v929_v50 = vpack.c.bf16 %v5762_v49, %v5758_v46  ;;  %v5766_v51 = vpop.f32.mrb[47].mxu0  ;;  %v5164_v46 = vld [vmem:[#allocation5 + $0x130] sm:$0xff]   ;;  %v5165_v49 = vld [vmem:[#allocation5 + $0x138] sm:$0xff]  }
 0x275   :  { %4596 = vmatpush3.bf16.msra.mxu0 %v5141_v45  ;;  %v928_v52 = vpack.c.bf16 %v5766_v51, %v5760_v48  ;;  %v5860_v45 = vpop.f32.mrb[8].mxu1  ;;  %v5159_v51 = vld [vmem:[#allocation5 + $0x108] sm:$0xff]  }
 0x276   :  { %4601 = vmatprep.subr.bf16.mxu0 %v5142_v47 }
 0x278   :  { %4598 = vmatmul.mubr.msk.bf16.vlgmr.msra.gmra.mrb[64].mxu0 %vm1098_vm1, %v921_v19 }
 0x279   :  { %4602 = vmatpush3.bf16.msra.mxu0 %v5142_v47  ;;  %4609 = vmatprep.mubr.msk.bf16.mxu0 %vm1098_vm1, %v922_v28  ;;  %v5772_v54 = vpop.f32.mrb[48].mxu0  ;;  %v940_v28 = vpack.c.bf16 %v5838_v25, %v5830_v22  ;;  %v5862_v47 = vpop.f32.mrb[9].mxu1 }
 0x27a   :  { %4603 = vmatprep.subr.bf16.mxu0 %v5143_v53  ;;  %v5774_v56 = vpop.f32.mrb[49].mxu0 }
 0x27b   :  { %v5776_v57 = vpop.f32.mrb[50].mxu0 }
 0x27c   :  { %v931_v58 = vpack.c.bf16 %v5776_v57, %v5772_v54  ;;  %v5780_v59 = vpop.f32.mrb[51].mxu0  ;;  %v5168_v54 = vld [vmem:[#allocation5 + $0x150] sm:$0xff]   ;;  %v5169_v57 = vld [vmem:[#allocation5 + $0x158] sm:$0xff]  }
 0x27d   :  { %4604 = vmatpush3.bf16.msra.mxu0 %v5143_v53  ;;  %v930_v60 = vpack.c.bf16 %v5780_v59, %v5774_v56  ;;  %v5864_v53 = vpop.f32.mrb[10].mxu1  ;;  %v5167_v56 = vld [vmem:[#allocation5 + $0x148] sm:$0xff]  }
 0x27e   :  { %4605 = vmatprep.subr.bf16.mxu0 %v5144_v55  ;;  %v943_v33 = vpack.c.bf16 %v5864_v53, %v5860_v45  ;;  %v5171_v59 = vld [vmem:[#allocation5 + $0x168] sm:$0xff]  }
 0x281   :  { %4606 = vmatpush3.bf16.msra.mxu0 %v5144_v55  ;;  %v5792_v2 = vpop.f32.mrb[52].mxu0  ;;  %v5157_v55 = vld [vmem:[#allocation5 + $0xf8] sm:$0xff]  }
 0x282   :  { %4607 = vmatprep.subr.bf16.mxu0 %v5145_v62  ;;  %v5796_v5 = vpop.f32.mrb[53].mxu0 }
 0x283   :  { %v5800_v7 = vpop.f32.mrb[54].mxu0 }
 0x284   :  { %v933_v8 = vpack.c.bf16 %v5800_v7, %v5792_v2  ;;  %v5804_v9 = vpop.f32.mrb[55].mxu0  ;;  %v5173_v2 = vld [vmem:[#allocation5 + $0x178] sm:$0xff]   ;;  %v5175_v7 = vld [vmem:[#allocation5 + $0x188] sm:$0xff]  }
 0x285   :  { %4608 = vmatpush3.bf16.msra.mxu0 %v5145_v62  ;;  %v932_v10 = vpack.c.bf16 %v5804_v9, %v5796_v5  ;;  %v5174_v5 = vld [vmem:[#allocation5 + $0x180] sm:$0xff]   ;;  %v5177_v9 = vld [vmem:[#allocation5 + $0x198] sm:$0xff]  }
 0x286   :  { %4613 = vmatprep.subr.bf16.mxu0 %v5146_v4 }
 0x288   :  { %4610 = vmatmul.mubr.msk.bf16.vlgmr.msra.gmra.mrb[64].mxu0 %vm1098_vm1, %v923_v26  ;;  %v5150_v26 = vld [vmem:[#allocation5 + $0xc0] sm:$0xff]  }
 0x289   :  { %4614 = vmatpush3.bf16.msra.mxu0 %v5146_v4  ;;  %4621 = vmatprep.mubr.msk.bf16.mxu0 %vm1098_vm1, %v924_v36  ;;  %v5816_v13 = vpop.f32.mrb[56].mxu0  ;;  %v5151_v36 = vld [vmem:[#allocation5 + $0xc8] sm:$0xff]  }
 0x28a   :  { %4615 = vmatprep.subr.bf16.mxu0 %v5147_v11  ;;  %v5818_v15 = vpop.f32.mrb[57].mxu0 }
 0x28b   :  { %v5820_v16 = vpop.f32.mrb[58].mxu0 }
 0x28c   :  { %v935_v17 = vpack.c.bf16 %v5820_v16, %v5816_v13  ;;  %v5824_v18 = vpop.f32.mrb[59].mxu0  ;;  %v5179_v13 = vld [vmem:[#allocation5 + $0x1a8] sm:$0xff]  }
 0x28d   :  { %4616 = vmatpush3.bf16.msra.mxu0 %v5147_v11  ;;  %v934_v19 = vpack.c.bf16 %v5824_v18, %v5818_v15  ;;  %v5183_v15 = vld [vmem:[#allocation5 + $0x1c8] sm:$0xff]   ;;  %v5189_v18 = vld [vmem:[#allocation5 + $0x1f8] sm:$0xff]  }
 0x28e   :  { %4617 = vmatprep.subr.bf16.mxu0 %v5148_v14  ;;  %v5187_v16 = vld [vmem:[#allocation5 + $0x1e8] sm:$0xff]  }
 0x291   :  { %4618 = vmatpush3.bf16.msra.mxu0 %v5148_v14  ;;  %v5834_v23 = vpop.f32.mrb[60].mxu0  ;;  %v5161_v14 = vld [vmem:[#allocation5 + $0x118] sm:$0xff]  }
 0x292   :  { %4619 = vmatprep.subr.bf16.mxu0 %v5149_v20  ;;  %v5840_v27 = vpop.f32.mrb[61].mxu0 }
 0x293   :  { %v5844_v29 = vpop.f32.mrb[62].mxu0 }
 0x294   :  { %v937_v31 = vpack.c.bf16 %v5844_v29, %v5834_v23  ;;  %v5848_v32 = vpop.f32.mrb[63].mxu0 }
 0x295   :  { %4620 = vmatpush3.bf16.msra.mxu0 %v5149_v20  ;;  %v936_v35 = vpack.c.bf16 %v5848_v32, %v5840_v27  ;;  %v5162_v20 = vld [vmem:[#allocation5 + $0x120] sm:$0xff]  }
 0x296   :  { %4625 = vmatprep.subr.bf16.mxu0 %v5150_v26 }
 0x298   :  { %4622 = vmatmul.mubr.msk.bf16.vlgmr.msra.gmra.mrb[64].mxu0 %vm1098_vm1, %v925_v34  ;;  %v5868_v34 = vpop.f32.mrb[11].mxu1 }
 0x299   :  { %4626 = vmatpush3.bf16.msra.mxu0 %v5150_v26  ;;  %4633 = vmatprep.mubr.msk.bf16.mxu0 %vm1098_vm1, %v926_v44  ;;  %v942_v40 = vpack.c.bf16 %v5868_v34, %v5862_v47  ;;  %v5156_v44 = vld [vmem:[#allocation5 + $0xf0] sm:$0xff]   ;;  %v5880_v62 = vpop.f32.mrb[12].mxu1  ;;  %v5163_v26 = vld [vmem:[#allocation5 + $0x128] sm:$0xff]  }
 0x29a   :  { %4627 = vmatprep.subr.bf16.mxu0 %v5151_v36  ;;  %v5882_v4 = vpop.f32.mrb[13].mxu1 }
 0x29b   :  { %v5884_v11 = vpop.f32.mrb[14].mxu1 }
 0x29c   :  { %v945_v38 = vpack.c.bf16 %v5884_v11, %v5880_v62  ;;  %v5888_v41 = vpop.f32.mrb[15].mxu1 }
 0x29d   :  { %4628 = vmatpush3.bf16.msra.mxu0 %v5151_v36  ;;  %v944_v48 = vpack.c.bf16 %v5888_v41, %v5882_v4 }
 0x29e   :  { %4629 = vmatprep.subr.bf16.mxu0 %v5152_v37 }
 0x2a1   :  { %4630 = vmatpush3.bf16.msra.mxu0 %v5152_v37 }
 0x2a2   :  { %4631 = vmatprep.subr.bf16.mxu0 %v5153_v39 }
 0x2a5   :  { %4632 = vmatpush3.bf16.msra.mxu0 %v5153_v39 }
 0x2a6   :  { %4637 = vmatprep.subr.bf16.mxu0 %v5154_v30 }
 0x2a8   :  { %4634 = vmatmul.mubr.msk.bf16.vlgmr.msra.gmra.mrb[64].mxu0 %vm1098_vm1, %v927_v42  ;;  %v5158_v42 = vld [vmem:[#allocation5 + $0x100] sm:$0xff]  }
 0x2a9   :  { %4638 = vmatpush3.bf16.msra.mxu0 %v5154_v30  ;;  %4645 = vmatprep.mubr.msk.bf16.mxu0 %vm1098_vm1, %v928_v52  ;;  %v5160_v52 = vld [vmem:[#allocation5 + $0x110] sm:$0xff]  }
 0x2aa   :  { %4639 = vmatprep.subr.bf16.mxu0 %v5155_v43 }
 0x2ad   :  { %4640 = vmatpush3.bf16.msra.mxu0 %v5155_v43 }
 0x2ae   :  { %4641 = vmatprep.subr.bf16.mxu0 %v5156_v44 }
 0x2b1   :  { %4642 = vmatpush3.bf16.msra.mxu0 %v5156_v44 }
 0x2b2   :  { %4643 = vmatprep.subr.bf16.mxu0 %v5157_v55 }
 0x2b5   :  { %4644 = vmatpush3.bf16.msra.mxu0 %v5157_v55 }
 0x2b6   :  { %4649 = vmatprep.subr.bf16.mxu0 %v5158_v42 }
 0x2b8   :  { %4646 = vmatmul.mubr.msk.bf16.vlgmr.msra.gmra.mrb[64].mxu0 %vm1098_vm1, %v929_v50  ;;  %v5166_v50 = vld [vmem:[#allocation5 + $0x140] sm:$0xff]  }
 0x2b9   :  { %4650 = vmatpush3.bf16.msra.mxu0 %v5158_v42  ;;  %4657 = vmatprep.mubr.msk.bf16.mxu0 %vm1098_vm1, %v930_v60  ;;  %v5172_v60 = vld [vmem:[#allocation5 + $0x170] sm:$0xff]  }
 0x2ba   :  { %4651 = vmatprep.subr.bf16.mxu0 %v5159_v51 }
 0x2bd   :  { %4652 = vmatpush3.bf16.msra.mxu0 %v5159_v51 }
 0x2be   :  { %4653 = vmatprep.subr.bf16.mxu0 %v5160_v52 }
 0x2c1   :  { %4654 = vmatpush3.bf16.msra.mxu0 %v5160_v52 }
 0x2c2   :  { %4655 = vmatprep.subr.bf16.mxu0 %v5161_v14 }
 0x2c5   :  { %4656 = vmatpush3.bf16.msra.mxu0 %v5161_v14 }
 0x2c6   :  { %4661 = vmatprep.subr.bf16.mxu0 %v5162_v20 }
 0x2c8   :  { %4658 = vmatmul.mubr.msk.bf16.vlgmr.msra.gmra.mrb[64].mxu0 %vm1098_vm1, %v931_v58  ;;  %v5170_v58 = vld [vmem:[#allocation5 + $0x160] sm:$0xff]  }
 0x2c9   :  { %4662 = vmatpush3.bf16.msra.mxu0 %v5162_v20  ;;  %4669 = vmatprep.mubr.msk.bf16.mxu0 %vm1098_vm1, %v932_v10  ;;  %v5178_v10 = vld [vmem:[#allocation5 + $0x1a0] sm:$0xff]  }
 0x2ca   :  { %4663 = vmatprep.subr.bf16.mxu0 %v5163_v26 }
 0x2cd   :  { %4664 = vmatpush3.bf16.msra.mxu0 %v5163_v26 }
 0x2ce   :  { %4665 = vmatprep.subr.bf16.mxu0 %v5164_v46 }
 0x2d1   :  { %4666 = vmatpush3.bf16.msra.mxu0 %v5164_v46 }
 0x2d2   :  { %4667 = vmatprep.subr.bf16.mxu0 %v5165_v49 }
 0x2d5   :  { %4668 = vmatpush3.bf16.msra.mxu0 %v5165_v49 }
 0x2d6   :  { %4673 = vmatprep.subr.bf16.mxu0 %v5166_v50 }
 0x2d8   :  { %4670 = vmatmul.mubr.msk.bf16.vlgmr.msra.gmra.mrb[64].mxu0 %vm1098_vm1, %v933_v8  ;;  %v5176_v8 = vld [vmem:[#allocation5 + $0x190] sm:$0xff]  }
 0x2d9   :  { %4674 = vmatpush3.bf16.msra.mxu0 %v5166_v50  ;;  %4681 = vmatprep.mubr.msk.bf16.mxu0 %vm1098_vm1, %v934_v19  ;;  %v5190_v19 = vld [vmem:[%s6175_s8] sm:$0xff]  }
 0x2da   :  { %4675 = vmatprep.subr.bf16.mxu0 %v5167_v56  ;;  %4749 = vmatprep.mubr.msk.bf16.mxu1 %vm2605_vm2, %v5190_v19 }
 0x2dd   :  { %4676 = vmatpush3.bf16.msra.mxu0 %v5167_v56 }
 0x2de   :  { %4677 = vmatprep.subr.bf16.mxu0 %v5168_v54 }
 0x2e1   :  { %4678 = vmatpush3.bf16.msra.mxu0 %v5168_v54  ;;  %v4083_v54 = vld [vmem:[#allocation7] ss:$0 sm:$0xff] }
 0x2e2   :  { %4679 = vmatprep.subr.bf16.mxu0 %v5169_v57 }
 0x2e5   :  { %4680 = vmatpush3.bf16.msra.mxu0 %v5169_v57 }
 0x2e6   :  { %4685 = vmatprep.subr.bf16.mxu0 %v5170_v58 }
 0x2e8   :  { %4682 = vmatmul.mubr.msk.bf16.vlgmr.msra.gmra.mrb[64].mxu0 %vm1098_vm1, %v935_v17  ;;  %v5188_v17 = vld [vmem:[#allocation5 + $0x1f0] sm:$0xff]  }
 0x2e9   :  { %4686 = vmatpush3.bf16.msra.mxu0 %v5170_v58  ;;  %4693 = vmatprep.mubr.msk.bf16.mxu0 %vm1098_vm1, %v936_v35 }
 0x2ea   :  { %4687 = vmatprep.subr.bf16.mxu0 %v5171_v59 }
 0x2ed   :  { %4688 = vmatpush3.bf16.msra.mxu0 %v5171_v59 }
 0x2ee   :  { %4689 = vmatprep.subr.bf16.mxu0 %v5172_v60 }
 0x2f1   :  { %4690 = vmatpush3.bf16.msra.mxu0 %v5172_v60 }
 0x2f2   :  { %4691 = vmatprep.subr.bf16.mxu0 %v5173_v2 }
 0x2f5   :  { %4692 = vmatpush3.bf16.msra.mxu0 %v5173_v2  ;;  %v4084_v2 = vld [vmem:[#allocation8] ss:$0 sm:$0xff] }
 0x2f6   :  { %4697 = vmatprep.subr.bf16.mxu0 %v5174_v5 }
 0x2f8   :  { %4694 = vmatmul.mubr.msk.bf16.vlgmr.msra.gmra.mrb[64].mxu0 %vm1098_vm1, %v937_v31 }
 0x2f9   :  { %4698 = vmatpush3.bf16.msra.mxu0 %v5174_v5  ;;  %4705 = vmatprep.mubr.msk.bf16.mxu0 %vm1098_vm1, %v938_v6  ;;  %v5182_v6 = vld [vmem:[#allocation5 + $0x1c0] sm:$0xff]  }
 0x2fa   :  { %4699 = vmatprep.subr.bf16.mxu0 %v5175_v7 }
 0x2fd   :  { %4700 = vmatpush3.bf16.msra.mxu0 %v5175_v7 }
 0x2fe   :  { %4701 = vmatprep.subr.bf16.mxu0 %v5176_v8 }
 0x301   :  { %4702 = vmatpush3.bf16.msra.mxu0 %v5176_v8 }
 0x302   :  { %4703 = vmatprep.subr.bf16.mxu0 %v5177_v9 }
 0x305   :  { %4704 = vmatpush3.bf16.msra.mxu0 %v5177_v9 }
 0x306   :  { %4709 = vmatprep.subr.bf16.mxu0 %v5178_v10 }
 0x308   :  { %4706 = vmatmul.mubr.msk.bf16.vlgmr.msra.gmra.mrb[64].mxu0 %vm1098_vm1, %v939_v1  ;;  %v5186_v1 = vld [vmem:[#allocation5 + $0x1e0] sm:$0xff]  }
 0x309   :  { %4710 = vmatpush3.bf16.msra.mxu0 %v5178_v10  ;;  %4717 = vmatprep.mubr.msk.bf16.mxu0 %vm1098_vm1, %v940_v28 }
 0x30a   :  { %4711 = vmatprep.subr.bf16.mxu0 %v5179_v13 }
 0x30d   :  { %4712 = vmatpush3.bf16.msra.mxu0 %v5179_v13 }
 0x30e   :  { %4713 = vmatprep.subr.bf16.mxu0 %v5180_v63 }
 0x311   :  { %4714 = vmatpush3.bf16.msra.mxu0 %v5180_v63 }
 0x312   :  { %4715 = vmatprep.subr.bf16.mxu0 %v5181_v3 }
 0x315   :  { %4716 = vmatpush3.bf16.msra.mxu0 %v5181_v3 }
 0x316   :  { %4721 = vmatprep.subr.bf16.mxu0 %v5182_v6 }
 0x318   :  { %4718 = vmatmul.mubr.msk.bf16.vlgmr.msra.gmra.mrb[64].mxu0 %vm1098_vm1, %v941_v24 }
 0x319   :  { %4722 = vmatpush3.bf16.msra.mxu0 %v5182_v6  ;;  %4729 = vmatprep.mubr.msk.bf16.mxu0 %vm1098_vm1, %v942_v40 }
 0x31a   :  { %4723 = vmatprep.subr.bf16.mxu0 %v5183_v15 }
 0x31d   :  { %4724 = vmatpush3.bf16.msra.mxu0 %v5183_v15 }
 0x31e   :  { %4725 = vmatprep.subr.bf16.mxu0 %v5184_v61 }
 0x321   :  { %4726 = vmatpush3.bf16.msra.mxu0 %v5184_v61 }
 0x322   :  { %4727 = vmatprep.subr.bf16.mxu0 %v5185_v0 }
 0x325   :  { %4728 = vmatpush3.bf16.msra.mxu0 %v5185_v0 }
 0x326   :  { %4733 = vmatprep.subr.bf16.mxu0 %v5186_v1 }
 0x328   :  { %4730 = vmatmul.mubr.msk.bf16.vlgmr.msra.gmra.mrb[64].mxu0 %vm1098_vm1, %v943_v33 }
 0x329   :  { %4734 = vmatpush3.bf16.msra.mxu0 %v5186_v1  ;;  %4741 = vmatprep.mubr.msk.bf16.mxu0 %vm1098_vm1, %v944_v48 }
 0x32a   :  { %4735 = vmatprep.subr.bf16.mxu0 %v5187_v16 }
 0x32d   :  { %4736 = vmatpush3.bf16.msra.mxu0 %v5187_v16 }
 0x32e   :  { %4737 = vmatprep.subr.bf16.mxu0 %v5188_v17 }
 0x331   :  { %4738 = vmatpush3.bf16.msra.mxu0 %v5188_v17 }
 0x332   :  { %4739 = vmatprep.subr.bf16.mxu0 %v5189_v18 }
 0x335   :  { %4740 = vmatpush3.bf16.msra.mxu0 %v5189_v18 }
 0x338   :  { %4742 = vmatmul.mubr.msk.bf16.vlgmr.msra.gmra.mrb[64].mxu0 %vm1098_vm1, %v945_v38 }
 0x40b   :  { %v4743_v22 = vpop.f32.mrb[64].mxu0 }
 0x40c   :  { %v2376_v12 = vpop.f32.mrb[65].mxu0  ;;  %v2404_v27 = vadd.f32 %v4743_v22, %v4082_v21  ;;  %v5202_v22 = vld [vmem:[#allocation10 + $0x40] sm:$0xff]  }
 0x40d   :  { %v2402_v23 = vadd.f32 %v4082_v21, %v2376_v12  ;;  %v4744_v24 = vpop.f32.mrb[66].mxu0  ;;  %v5191_v12 = vld [vmem:[%s6175_s8 + $0x8] sm:$0xff]  }
 0x40e   :  { %v2379_v25 = vpop.f32.mrb[67].mxu0  ;;  %v2405_v31 = vadd.f32 %v4744_v24, %v4082_v21  ;;  %v2419_v36 = vmul.f32 %v2404_v27, %v2404_v27  ;;  %v5203_v24 = vld [vmem:[#allocation10 + $0x48] sm:$0xff]  }
 0x40f   :  { %v2403_v28 = vadd.f32 %v4082_v21, %v2379_v25  ;;  %v2417_v29 = vmul.f32 %v2402_v23, %v2402_v23  ;;  %v5204_v25 = vld [vmem:[#allocation10 + $0x50] sm:$0xff]  }
 0x410   :  { %v2420_v45 = vmul.f32 %v2405_v31, %v2405_v31 }
 0x411   :  { %v2406_v32 = vadd.f32 %v2403_v28, %v2402_v23  ;;  %v2418_v35 = vmul.f32 %v2403_v28, %v2403_v28 }
 0x413   :  { %v2407_v37 = vadd.f32 %v2406_v32, %v2404_v27  ;;  %v2421_v39 = vadd.f32 %v2418_v35, %v2417_v29  ;;  %v5207_v29 = vld [vmem:[#allocation10 + $0x58] sm:$0xff]   ;;  %v5196_v35 = vld [vmem:[%s6175_s8 + $0x30] sm:$0xff]  }
 0x414   :  { %v5195_v32 = vld [vmem:[%s6175_s8 + $0x28] sm:$0xff]  }
 0x415   :  { %v2408_v47 = vadd.f32 %v2407_v37, %v2405_v31  ;;  %v2422_v53 = vadd.f32 %v2421_v39, %v2419_v36  ;;  %v5211_v36 = vld [vmem:[#allocation10 + $0x68] sm:$0xff]   ;;  %v5198_v39 = vld [vmem:[%s6175_s8 + $0x40] sm:$0xff]  }
 0x416   :  { %v5197_v37 = vld [vmem:[%s6175_s8 + $0x38] sm:$0xff]  }
 0x417   :  { %v2409_v30 = vrot.slane %v2408_v47, 4  ;;  %v2423_v33 = vadd.f32 %v2422_v53, %v2420_v45  ;;  %v5199_v45 = vld [vmem:[%s6175_s8 + $0x48] sm:$0xff]   ;;  %v5201_v53 = vld [vmem:[%s6175_s8 + $0x58] sm:$0xff]  }
 0x419   :  { %v2410_v34 = vadd.f32 %v2409_v30, %v2408_v47  ;;  %v2424_v40 = vrot.slane %v2423_v33, 4  ;;  %v5200_v47 = vld [vmem:[%s6175_s8 + $0x50] sm:$0xff]   ;;  %v5205_v30 = vld [vmem:[%s6175_s8 + $0x60] sm:$0xff]  }
 0x41b   :  { %v2411_v43 = vrot.slane %v2410_v34, 2  ;;  %v2425_v44 = vadd.f32 %v2424_v40, %v2423_v33  ;;  %v5206_v33 = vld [vmem:[%s6175_s8 + $0x68] sm:$0xff]   ;;  %v5210_v40 = vld [vmem:[%s6175_s8 + $0x78] sm:$0xff]  }
 0x41d   :  { %v2412_v55 = vadd.f32 %v2411_v43, %v2410_v34  ;;  %v2426_v62 = vrot.slane %v2425_v44, 2  ;;  %v5208_v34 = vld [vmem:[%s6175_s8 + $0x70] sm:$0xff]   ;;  %v5212_v43 = vld [vmem:[%s6175_s8 + $0x80] sm:$0xff]  }
 0x41f   :  { %v2413_v4 = vrot.slane %v2412_v55, 1  ;;  %v2427_v11 = vadd.f32 %v2426_v62, %v2425_v44  ;;  %v5213_v44 = vld [vmem:[#allocation10 + $0x70] sm:$0xff]   ;;  %v5215_v62 = vld [vmem:[#allocation10 + $0x78] sm:$0xff]  }
 0x421   :  { %v2414_v38 = vadd.f32 %v2413_v4, %v2412_v55  ;;  %v2428_v41 = vrot.slane %v2427_v11, 1  ;;  %v5214_v55 = vld [vmem:[%s6175_s8 + $0x88] sm:$0xff]  }
 0x422   :  { %v5216_v4 = vld [vmem:[#allocation10] sm:$0xff]  }
 0x423   :  { %v2416_v42 = vmul.f32 0.03125, %v2414_v38  ;;  %v2429_v48 = vadd.f32 %v2428_v41, %v2427_v11 }
 0x425   :  { %v2430_v51 = vmul.f32 0.03125, %v2429_v48  ;;  %v2431_v52 = vmul.f32 %v2416_v42, %v2416_v42  ;;  %v2434_v14 = vsub.f32 %v2403_v28, %v2416_v42  ;;  %v2433_v20 = vsub.f32 %v2402_v23, %v2416_v42  ;;  %v5192_v23 = vld [vmem:[%s6175_s8 + $0x10] sm:$0xff]   ;;  %v5194_v28 = vld [vmem:[%s6175_s8 + $0x20] sm:$0xff]  }
 0x426   :  { %v2435_v26 = vsub.f32 %v2404_v27, %v2416_v42  ;;  %v2436_v46 = vsub.f32 %v2405_v31, %v2416_v42  ;;  %v5193_v27 = vld [vmem:[%s6175_s8 + $0x18] sm:$0xff]   ;;  %v5209_v31 = vld [vmem:[#allocation10 + $0x60] sm:$0xff]  }
 0x427   :  { %v2432_v49 = vsub.f32 %v2430_v51, %v2431_v52 }
 0x429   :  { %v2437_v50 = vadd.f32 0.8, %v2432_v49 }
 0x42b   :  { %5280 = vrsqrt.f32 %v2437_v50  ;;  %v5217_v50 = vld [vmem:[#allocation10 + $0x8] sm:$0xff]  }
 0x435   :  { %v5281_v56 = vpop.eup %5280 }
 0x436   :  { %v2440_v57 = vmul.f32 %v5281_v56, %v2434_v14  ;;  %v2439_v58 = vmul.f32 %v5281_v56, %v2433_v20  ;;  %v2441_v59 = vmul.f32 %v5281_v56, %v2435_v26  ;;  %v2442_v60 = vmul.f32 %v5281_v56, %v2436_v46 }
 0x438   :  { %v2451_v5 = vmul.f32 %v4083_v54, %v2440_v57  ;;  %v2450_v7 = vmul.f32 %v4083_v54, %v2439_v58  ;;  %v2452_v8 = vmul.f32 %v4083_v54, %v2441_v59  ;;  %v2453_v9 = vmul.f32 %v4083_v54, %v2442_v60  ;;  %v5218_v54 = vld [vmem:[#allocation10 + $0x10] sm:$0xff]  }
 0x43a   :  { %v2461_v10 = vadd.f32 %v4084_v2, %v2450_v7  ;;  %v2462_v13 = vadd.f32 %v4084_v2, %v2451_v5  ;;  %v2463_v63 = vadd.f32 %v4084_v2, %v2452_v8  ;;  %v2464_v3 = vadd.f32 %v4084_v2, %v2453_v9  ;;  %v5219_v5 = vld [vmem:[#allocation10 + $0x18] sm:$0xff]   ;;  %v5220_v8 = vld [vmem:[#allocation10 + $0x20] sm:$0xff]  }
 0x43c   :  { %vm2465_vm3 = vcmp.ge.f32.partialorder %v2461_v10, 0.0  ;;  %vm2466_vm4 = vcmp.ge.f32.partialorder %v2462_v13, 0.0  ;;  %v2469_v6 = vmul.f32 0.2, %v2461_v10  ;;  %v2470_v15 = vmul.f32 0.2, %v2462_v13 }
 0x43d   :  { %vm2467_vm5 = vcmp.ge.f32.partialorder %v2463_v63, 0.0  ;;  %vm2468_vm6 = vcmp.ge.f32.partialorder %v2464_v3, 0.0  ;;  %v2471_v61 = vmul.f32 0.2, %v2463_v63  ;;  %v2472_v0 = vmul.f32 0.2, %v2464_v3 }
 0x43e   :  { %v2473_v1 = vsel %vm2465_vm3, %v2461_v10, %v2469_v6  ;;  %v2474_v16 = vsel %vm2466_vm4, %v2462_v13, %v2470_v15  ;;  %v5221_v6 = vld [vmem:[#allocation10 + $0x28] sm:$0xff]  }
 0x43f   :  { %v2513_v17 = vpack.c.bf16 %v2474_v16, %v2473_v1  ;;  %v2475_v18 = vsel %vm2467_vm5, %v2463_v63, %v2471_v61  ;;  %v2476_v19 = vsel %vm2468_vm6, %v2464_v3, %v2472_v0  ;;  %v5222_v61 = vld [vmem:[#allocation10 + $0x30] sm:$0xff]  }
 0x440   :  { %v2514_v21 = vpack.c.bf16 %v2476_v19, %v2475_v18  ;;  %v5223_v19 = vld [vmem:[#allocation10 + $0x38] sm:$0xff]  }
 0x441   :  { %4745 = vmatprep.subr.bf16.mxu1 %v2513_v17 }
 0x442   :  { %4746 = vmatpush3.bf16.msra.mxu1 %v2513_v17 }
 0x443   :  { %4747 = vmatprep.subr.bf16.mxu1 %v2514_v21 }
 0x446   :  { %4748 = vmatpush3.bf16.msra.mxu1 %v2514_v21 }
 0x447   :  { %4785 = vmatprep.subr.bf16.mxu1 %v5202_v22 }
 0x449   :  { %4750 = vmatmul.mubr.msk.bf16.vlgmr.msra.gmra.mrb[16].mxu1 %vm2605_vm2, %v5191_v12 }
 0x44a   :  { %4753 = vmatprep.mubr.msk.bf16.mxu1 %vm2605_vm2, %v5192_v23  ;;  %4786 = vmatpush3.bf16.msra.mxu1 %v5202_v22  ;;  %v5224_v22 = vld [vmem:[#allocation10 + $0x80] sm:$0xff]  }
 0x44b   :  { %4787 = vmatprep.subr.bf16.mxu1 %v5203_v24 }
 0x44e   :  { %4788 = vmatpush3.bf16.msra.mxu1 %v5203_v24 }
 0x44f   :  { %4789 = vmatprep.subr.bf16.mxu1 %v5204_v25 }
 0x451   :  { %4754 = vmatmul.mubr.msk.bf16.gmra.mrb[20].mxu1 %vm2605_vm2, %v5193_v27 }
 0x452   :  { %4757 = vmatprep.mubr.msk.bf16.mxu1 %vm2605_vm2, %v5194_v28  ;;  %4790 = vmatpush3.bf16.msra.mxu1 %v5204_v25  ;;  %v5225_v28 = vld [vmem:[#allocation10 + $0x88] sm:$0xff]  }
 0x453   :  { %4791 = vmatprep.subr.bf16.mxu1 %v5207_v29 }
 0x456   :  { %4792 = vmatpush3.bf16.msra.mxu1 %v5207_v29  ;;  %v5226_v29 = vld [vmem:[#allocation10 + $0x90] sm:$0xff]  }
 0x457   :  { %4793 = vmatprep.subr.bf16.mxu1 %v5209_v31 }
 0x459   :  { %4758 = vmatmul.mubr.msk.bf16.gmra.mrb[24].mxu1 %vm2605_vm2, %v5195_v32  ;;  %v5228_v32 = vld [vmem:[#allocation10 + $0xa0] sm:$0xff]  }
 0x45a   :  { %4761 = vmatprep.mubr.msk.bf16.mxu1 %vm2605_vm2, %v5196_v35  ;;  %4794 = vmatpush3.bf16.msra.mxu1 %v5209_v31  ;;  %v5227_v31 = vld [vmem:[#allocation10 + $0x98] sm:$0xff]   ;;  %v5229_v35 = vld [vmem:[#allocation10 + $0xa8] sm:$0xff]  }
 0x45b   :  { %4795 = vmatprep.subr.bf16.mxu1 %v5211_v36 }
 0x45e   :  { %4796 = vmatpush3.bf16.msra.mxu1 %v5211_v36  ;;  %v5230_v36 = vld [vmem:[#allocation10 + $0xb0] sm:$0xff]  }
 0x45f   :  { %4797 = vmatprep.subr.bf16.mxu1 %v5213_v44 }
 0x461   :  { %4762 = vmatmul.mubr.msk.bf16.gmra.mrb[28].mxu1 %vm2605_vm2, %v5197_v37  ;;  %v5231_v37 = vld [vmem:[#allocation10 + $0xb8] sm:$0xff]  }
 0x462   :  { %4765 = vmatprep.mubr.msk.bf16.mxu1 %vm2605_vm2, %v5198_v39  ;;  %4798 = vmatpush3.bf16.msra.mxu1 %v5213_v44  ;;  %v5234_v44 = vld [vmem:[#allocation10 + $0xd0] sm:$0xff]  }
 0x463   :  { %4799 = vmatprep.subr.bf16.mxu1 %v5215_v62 }
 0x466   :  { %4800 = vmatpush3.bf16.msra.mxu1 %v5215_v62 }
 0x467   :  { %4805 = vmatprep.subr.bf16.mxu1 %v5216_v4 }
 0x469   :  { %4766 = vmatmul.mubr.msk.bf16.gmra.mrb[32].mxu1 %vm2605_vm2, %v5199_v45 }
 0x46a   :  { %4769 = vmatprep.mubr.msk.bf16.mxu1 %vm2605_vm2, %v5200_v47 }
 0x471   :  { %4770 = vmatmul.mubr.msk.bf16.gmra.mrb[36].mxu1 %vm2605_vm2, %v5201_v53  ;;  %v5232_v53 = vld [vmem:[#allocation10 + $0xc0] sm:$0xff]  }
 0x472   :  { %4773 = vmatprep.mubr.msk.bf16.mxu1 %vm2605_vm2, %v5205_v30 }
 0x479   :  { %4774 = vmatmul.mubr.msk.bf16.gmra.mrb[40].mxu1 %vm2605_vm2, %v5206_v33 }
 0x47a   :  { %4777 = vmatprep.mubr.msk.bf16.mxu1 %vm2605_vm2, %v5208_v34 }
 0x481   :  { %4778 = vmatmul.mubr.msk.bf16.gmra.mrb[44].mxu1 %vm2605_vm2, %v5210_v40  ;;  %v5233_v40 = vld [vmem:[#allocation10 + $0xc8] sm:$0xff]  }
 0x482   :  { %4781 = vmatprep.mubr.msk.bf16.mxu1 %vm2605_vm2, %v5212_v43 }
 0x489   :  { %4782 = vmatmul.mubr.msk.bf16.gmra.mrb[48].mxu1 %vm2605_vm2, %v5214_v55 }
 0x51c   :  { %v6035_v11 = vpop.f32.mrb[16].mxu1 }
 0x51d   :  { %v2694_v38 = vpop.f32.mrb[17].mxu1 }
 0x51e   :  { %v4752_v41 = vpop.f32.mrb[18].mxu1 }
 0x51f   :  { %v2838_v42 = vpack.c.bf16 %v4752_v41, %v6035_v11  ;;  %v2697_v48 = vpop.f32.mrb[19].mxu1  ;;  %v5235_v41 = vld [vmem:[#allocation10 + $0xd8] sm:$0xff]  }
 0x520   :  { %v2837_v51 = vpack.c.bf16 %v2697_v48, %v2694_v38  ;;  %v5236_v48 = vld [vmem:[#allocation10 + $0xe0] sm:$0xff]  }
 0x524   :  { %v4755_v52 = vpop.f32.mrb[20].mxu1 }
 0x525   :  { %v2710_v14 = vpop.f32.mrb[21].mxu1 }
 0x526   :  { %v4756_v20 = vpop.f32.mrb[22].mxu1 }
 0x527   :  { %v2840_v26 = vpack.c.bf16 %v4756_v20, %v4755_v52  ;;  %v2713_v46 = vpop.f32.mrb[23].mxu1 }
 0x528   :  { %v2839_v49 = vpack.c.bf16 %v2713_v46, %v2710_v14  ;;  %v5237_v46 = vld [vmem:[#allocation10 + $0xe8] sm:$0xff]  }
 0x52a   :  { %4801 = vmatprep.mubr.bf16.mxu1 %v2839_v49  ;;  %v5238_v49 = vld [vmem:[#allocation10 + $0xf0] sm:$0xff]  }
 0x52b   :  { %4802 = vmatmul.mubr.bf16.vlgmr.msra.gmra.mrb[52].mxu1 %v2840_v26 }
 0x52c   :  { %4806 = vmatpush3.bf16.msra.mxu1 %v5216_v4  ;;  %4821 = vmatprep.mubr.bf16.mxu1 %v2837_v51  ;;  %v6038_v56 = vpop.f32.mrb[24].mxu1 }
 0x52d   :  { %4807 = vmatprep.subr.bf16.mxu1 %v5217_v50  ;;  %v2726_v57 = vpop.f32.mrb[25].mxu1 }
 0x52e   :  { %v6040_v58 = vpop.f32.mrb[26].mxu1 }
 0x52f   :  { %v2842_v59 = vpack.c.bf16 %v6040_v58, %v6038_v56  ;;  %v2729_v60 = vpop.f32.mrb[27].mxu1  ;;  %v5240_v56 = vld [vmem:[#allocation10 + $0x100] sm:$0xff]   ;;  %v5243_v58 = vld [vmem:[#allocation10 + $0x118] sm:$0xff]  }
 0x530   :  { %4808 = vmatpush3.bf16.msra.mxu1 %v5217_v50  ;;  %v2841_v2 = vpack.c.bf16 %v2729_v60, %v2726_v57  ;;  %v5239_v50 = vld [vmem:[#allocation10 + $0xf8] sm:$0xff]   ;;  %v5242_v57 = vld [vmem:[#allocation10 + $0x110] sm:$0xff]   ;;  %v5245_v60 = vld [vmem:[#allocation10 + $0x128] sm:$0xff]  }
 0x531   :  { %4809 = vmatprep.subr.bf16.mxu1 %v5218_v54 }
 0x534   :  { %4810 = vmatpush3.bf16.msra.mxu1 %v5218_v54  ;;  %v6044_v7 = vpop.f32.mrb[28].mxu1  ;;  %v5241_v54 = vld [vmem:[#allocation10 + $0x108] sm:$0xff]  }
 0x535   :  { %4811 = vmatprep.subr.bf16.mxu1 %v5219_v5  ;;  %v6046_v9 = vpop.f32.mrb[29].mxu1 }
 0x536   :  { %v6048_v10 = vpop.f32.mrb[30].mxu1 }
 0x537   :  { %v2844_v13 = vpack.c.bf16 %v6048_v10, %v6044_v7  ;;  %v6052_v63 = vpop.f32.mrb[31].mxu1  ;;  %v5248_v7 = vld [vmem:[#allocation10 + $0x140] sm:$0xff]   ;;  %v5251_v10 = vld [vmem:[#allocation10 + $0x158] sm:$0xff]  }
 0x538   :  { %4812 = vmatpush3.bf16.msra.mxu1 %v5219_v5  ;;  %v2843_v3 = vpack.c.bf16 %v6052_v63, %v6046_v9  ;;  %v5247_v5 = vld [vmem:[#allocation10 + $0x138] sm:$0xff]   ;;  %v5250_v9 = vld [vmem:[#allocation10 + $0x150] sm:$0xff]   ;;  %v5253_v63 = vld [vmem:[#allocation10 + $0x168] sm:$0xff]  }
 0x539   :  { %4813 = vmatprep.subr.bf16.mxu1 %v5220_v8 }
 0x53c   :  { %4814 = vmatpush3.bf16.msra.mxu1 %v5220_v8  ;;  %v6056_v15 = vpop.f32.mrb[32].mxu1  ;;  %v5249_v8 = vld [vmem:[#allocation10 + $0x148] sm:$0xff]  }
 0x53d   :  { %4815 = vmatprep.subr.bf16.mxu1 %v5221_v6  ;;  %v6058_v0 = vpop.f32.mrb[33].mxu1 }
 0x53e   :  { %v6060_v1 = vpop.f32.mrb[34].mxu1 }
 0x53f   :  { %v2846_v16 = vpack.c.bf16 %v6060_v1, %v6056_v15  ;;  %v6064_v17 = vpop.f32.mrb[35].mxu1  ;;  %v5256_v15 = vld [vmem:[#allocation10 + $0x180] sm:$0xff]   ;;  %v5259_v1 = vld [vmem:[#allocation10 + $0x198] sm:$0xff]  }
 0x540   :  { %4816 = vmatpush3.bf16.msra.mxu1 %v5221_v6  ;;  %v2845_v18 = vpack.c.bf16 %v6064_v17, %v6058_v0  ;;  %v5255_v6 = vld [vmem:[#allocation10 + $0x178] sm:$0xff]   ;;  %v5258_v0 = vld [vmem:[#allocation10 + $0x190] sm:$0xff]   ;;  %v5261_v17 = vld [vmem:[#allocation10 + $0x1a8] sm:$0xff]  }
 0x541   :  { %4817 = vmatprep.subr.bf16.mxu1 %v5222_v61 }
 0x544   :  { %4818 = vmatpush3.bf16.msra.mxu1 %v5222_v61  ;;  %v6068_v21 = vpop.f32.mrb[36].mxu1  ;;  %v5257_v61 = vld [vmem:[#allocation10 + $0x188] sm:$0xff]  }
 0x545   :  { %4819 = vmatprep.subr.bf16.mxu1 %v5223_v19  ;;  %v6070_v12 = vpop.f32.mrb[37].mxu1 }
 0x546   :  { %v6072_v23 = vpop.f32.mrb[38].mxu1 }
 0x547   :  { %v2848_v24 = vpack.c.bf16 %v6072_v23, %v6068_v21  ;;  %v6076_v25 = vpop.f32.mrb[39].mxu1  ;;  %v5264_v21 = vld [vmem:[#allocation10 + $0x1c0] sm:$0xff]   ;;  %v5267_v23 = vld [vmem:[#allocation10 + $0x1d8] sm:$0xff]  }
 0x548   :  { %4820 = vmatpush3.bf16.msra.mxu1 %v5223_v19  ;;  %v2847_v27 = vpack.c.bf16 %v6076_v25, %v6070_v12  ;;  %v5263_v19 = vld [vmem:[#allocation10 + $0x1b8] sm:$0xff]   ;;  %v5266_v12 = vld [vmem:[#allocation10 + $0x1d0] sm:$0xff]   ;;  %v5269_v25 = vld [vmem:[#allocation10 + $0x1e8] sm:$0xff]  }
 0x549   :  { %4825 = vmatprep.subr.bf16.mxu1 %v5224_v22 }
 0x54b   :  { %4822 = vmatmul.mubr.bf16.vlgmr.msra.gmra.mrb[52].mxu1 %v2838_v42 }
 0x54c   :  { %4826 = vmatpush3.bf16.msra.mxu1 %v5224_v22  ;;  %4841 = vmatprep.mubr.bf16.mxu1 %v2841_v2  ;;  %v6080_v39 = vpop.f32.mrb[40].mxu1  ;;  %v5246_v2 = vld [vmem:[#allocation10 + $0x130] sm:$0xff]   ;;  %v5265_v22 = vld [vmem:[#allocation10 + $0x1c8] sm:$0xff]  }
 0x54d   :  { %4827 = vmatprep.subr.bf16.mxu1 %v5225_v28  ;;  %v6082_v45 = vpop.f32.mrb[41].mxu1 }
 0x54e   :  { %v6084_v47 = vpop.f32.mrb[42].mxu1 }
 0x54f   :  { %v2850_v30 = vpack.c.bf16 %v6084_v47, %v6080_v39  ;;  %v6088_v33 = vpop.f32.mrb[43].mxu1  ;;  %v5278_v39 = vld [vmem:[#allocation10 + $0x230] sm:$0xff]  }
 0x550   :  { %4828 = vmatpush3.bf16.msra.mxu1 %v5225_v28  ;;  %v2849_v34 = vpack.c.bf16 %v6088_v33, %v6082_v45  ;;  %v5271_v28 = vld [vmem:[#allocation10 + $0x1f8] sm:$0xff]   ;;  %v4193_v47 = vld [vmem:[%s6177_s10] ss:$0 sm:$0xff] }
 0x551   :  { %4829 = vmatprep.subr.bf16.mxu1 %v5226_v29  ;;  %v5279_v45 = vld [vmem:[#allocation10 + $0x238] sm:$0xff]  }
 0x554   :  { %4830 = vmatpush3.bf16.msra.mxu1 %v5226_v29  ;;  %v6095_v43 = vpop.f32.mrb[44].mxu1  ;;  %v5272_v29 = vld [vmem:[#allocation10 + $0x200] sm:$0xff]  }
 0x555   :  { %4831 = vmatprep.subr.bf16.mxu1 %v5227_v31  ;;  %v6097_v55 = vpop.f32.mrb[45].mxu1 }
 0x556   :  { %v6099_v62 = vpop.f32.mrb[46].mxu1 }
 0x557   :  { %v6101_v4 = vpop.f32.mrb[47].mxu1  ;;  %v2852_v11 = vpack.c.bf16 %v6099_v62, %v6095_v43 }
 0x558   :  { %4832 = vmatpush3.bf16.msra.mxu1 %v5227_v31  ;;  %v2851_v38 = vpack.c.bf16 %v6101_v4, %v6097_v55  ;;  %v5273_v31 = vld [vmem:[#allocation10 + $0x208] sm:$0xff]  }
 0x559   :  { %4833 = vmatprep.subr.bf16.mxu1 %v5228_v32 }
 0x55c   :  { %4834 = vmatpush3.bf16.msra.mxu1 %v5228_v32  ;;  %v6107_v42 = vpop.f32.mrb[48].mxu1  ;;  %v5274_v32 = vld [vmem:[#allocation10 + $0x210] sm:$0xff]  }
 0x55d   :  { %4835 = vmatprep.subr.bf16.mxu1 %v5229_v35  ;;  %v6109_v51 = vpop.f32.mrb[49].mxu1 }
 0x55e   :  { %v6111_v52 = vpop.f32.mrb[50].mxu1 }
 0x55f   :  { %v6113_v14 = vpop.f32.mrb[51].mxu1  ;;  %v2854_v20 = vpack.c.bf16 %v6111_v52, %v6107_v42 }
 0x560   :  { %4836 = vmatpush3.bf16.msra.mxu1 %v5229_v35  ;;  %v2853_v26 = vpack.c.bf16 %v6113_v14, %v6109_v51  ;;  %v5275_v35 = vld [vmem:[#allocation10 + $0x218] sm:$0xff]  }
 0x561   :  { %4837 = vmatprep.subr.bf16.mxu1 %v5230_v36 }
 0x564   :  { %4838 = vmatpush3.bf16.msra.mxu1 %v5230_v36  ;;  %v5276_v36 = vld [vmem:[#allocation10 + $0x220] sm:$0xff]  }
 0x565   :  { %4839 = vmatprep.subr.bf16.mxu1 %v5231_v37 }
 0x568   :  { %4840 = vmatpush3.bf16.msra.mxu1 %v5231_v37  ;;  %v5277_v37 = vld [vmem:[#allocation10 + $0x228] sm:$0xff]  }
 0x569   :  { %4845 = vmatprep.subr.bf16.mxu1 %v5232_v53 }
 0x56b   :  { %4842 = vmatmul.mubr.bf16.vlgmr.msra.gmra.mrb[52].mxu1 %v2842_v59  ;;  %v5244_v59 = vld [vmem:[#allocation10 + $0x120] sm:$0xff]  }
 0x56c   :  { %4846 = vmatpush3.bf16.msra.mxu1 %v5232_v53  ;;  %4861 = vmatprep.mubr.bf16.mxu1 %v2843_v3  ;;  %v5254_v3 = vld [vmem:[#allocation10 + $0x170] sm:$0xff]  }
 0x56d   :  { %4847 = vmatprep.subr.bf16.mxu1 %v5233_v40 }
 0x570   :  { %4848 = vmatpush3.bf16.msra.mxu1 %v5233_v40 }
 0x571   :  { %4849 = vmatprep.subr.bf16.mxu1 %v5234_v44 }
 0x574   :  { %4850 = vmatpush3.bf16.msra.mxu1 %v5234_v44 }
 0x575   :  { %4851 = vmatprep.subr.bf16.mxu1 %v5235_v41 }
 0x578   :  { %4852 = vmatpush3.bf16.msra.mxu1 %v5235_v41 }
 0x579   :  { %4853 = vmatprep.subr.bf16.mxu1 %v5236_v48 }
 0x57c   :  { %4854 = vmatpush3.bf16.msra.mxu1 %v5236_v48 }
 0x57d   :  { %4855 = vmatprep.subr.bf16.mxu1 %v5237_v46 }
 0x580   :  { %4856 = vmatpush3.bf16.msra.mxu1 %v5237_v46 }
 0x581   :  { %4857 = vmatprep.subr.bf16.mxu1 %v5238_v49 }
 0x584   :  { %4858 = vmatpush3.bf16.msra.mxu1 %v5238_v49 }
 0x585   :  { %4859 = vmatprep.subr.bf16.mxu1 %v5239_v50 }
 0x588   :  { %4860 = vmatpush3.bf16.msra.mxu1 %v5239_v50 }
 0x589   :  { %4865 = vmatprep.subr.bf16.mxu1 %v5240_v56 }
 0x58b   :  { %4862 = vmatmul.mubr.bf16.vlgmr.msra.gmra.mrb[52].mxu1 %v2844_v13  ;;  %v5252_v13 = vld [vmem:[#allocation10 + $0x160] sm:$0xff]  }
 0x58c   :  { %4866 = vmatpush3.bf16.msra.mxu1 %v5240_v56  ;;  %4881 = vmatprep.mubr.bf16.mxu1 %v2845_v18  ;;  %v5262_v18 = vld [vmem:[#allocation10 + $0x1b0] sm:$0xff]  }
 0x58d   :  { %4867 = vmatprep.subr.bf16.mxu1 %v5241_v54 }
 0x590   :  { %4868 = vmatpush3.bf16.msra.mxu1 %v5241_v54 }
 0x591   :  { %4869 = vmatprep.subr.bf16.mxu1 %v5242_v57 }
 0x594   :  { %4870 = vmatpush3.bf16.msra.mxu1 %v5242_v57 }
 0x595   :  { %4871 = vmatprep.subr.bf16.mxu1 %v5243_v58 }
 0x598   :  { %4872 = vmatpush3.bf16.msra.mxu1 %v5243_v58 }
 0x599   :  { %4873 = vmatprep.subr.bf16.mxu1 %v5244_v59 }
 0x59c   :  { %4874 = vmatpush3.bf16.msra.mxu1 %v5244_v59 }
 0x59d   :  { %4875 = vmatprep.subr.bf16.mxu1 %v5245_v60 }
 0x5a0   :  { %4876 = vmatpush3.bf16.msra.mxu1 %v5245_v60 }
 0x5a1   :  { %4877 = vmatprep.subr.bf16.mxu1 %v5246_v2 }
 0x5a4   :  { %4878 = vmatpush3.bf16.msra.mxu1 %v5246_v2 }
 0x5a5   :  { %4879 = vmatprep.subr.bf16.mxu1 %v5247_v5 }
 0x5a8   :  { %4880 = vmatpush3.bf16.msra.mxu1 %v5247_v5 }
 0x5a9   :  { %4885 = vmatprep.subr.bf16.mxu1 %v5248_v7 }
 0x5ab   :  { %4882 = vmatmul.mubr.bf16.vlgmr.msra.gmra.mrb[52].mxu1 %v2846_v16  ;;  %v5260_v16 = vld [vmem:[#allocation10 + $0x1a0] sm:$0xff]  }
 0x5ac   :  { %4886 = vmatpush3.bf16.msra.mxu1 %v5248_v7  ;;  %4901 = vmatprep.mubr.bf16.mxu1 %v2847_v27  ;;  %v5270_v27 = vld [vmem:[#allocation10 + $0x1f0] sm:$0xff]  }
 0x5ad   :  { %4887 = vmatprep.subr.bf16.mxu1 %v5249_v8 }
 0x5b0   :  { %4888 = vmatpush3.bf16.msra.mxu1 %v5249_v8 }
 0x5b1   :  { %4889 = vmatprep.subr.bf16.mxu1 %v5250_v9 }
 0x5b4   :  { %4890 = vmatpush3.bf16.msra.mxu1 %v5250_v9 }
 0x5b5   :  { %4891 = vmatprep.subr.bf16.mxu1 %v5251_v10 }
 0x5b8   :  { %4892 = vmatpush3.bf16.msra.mxu1 %v5251_v10 }
 0x5b9   :  { %4893 = vmatprep.subr.bf16.mxu1 %v5252_v13 }
 0x5bc   :  { %4894 = vmatpush3.bf16.msra.mxu1 %v5252_v13 }
 0x5bd   :  { %4895 = vmatprep.subr.bf16.mxu1 %v5253_v63 }
 0x5c0   :  { %4896 = vmatpush3.bf16.msra.mxu1 %v5253_v63 }
 0x5c1   :  { %4897 = vmatprep.subr.bf16.mxu1 %v5254_v3 }
 0x5c4   :  { %4898 = vmatpush3.bf16.msra.mxu1 %v5254_v3 }
 0x5c5   :  { %4899 = vmatprep.subr.bf16.mxu1 %v5255_v6 }
 0x5c8   :  { %4900 = vmatpush3.bf16.msra.mxu1 %v5255_v6 }
 0x5c9   :  { %4905 = vmatprep.subr.bf16.mxu1 %v5256_v15 }
 0x5cb   :  { %4902 = vmatmul.mubr.bf16.vlgmr.msra.gmra.mrb[52].mxu1 %v2848_v24  ;;  %v5268_v24 = vld [vmem:[#allocation10 + $0x1e0] sm:$0xff]  }
 0x5cc   :  { %4906 = vmatpush3.bf16.msra.mxu1 %v5256_v15  ;;  %4921 = vmatprep.mubr.bf16.mxu1 %v2849_v34 }
 0x5cd   :  { %4907 = vmatprep.subr.bf16.mxu1 %v5257_v61 }
 0x5d0   :  { %4908 = vmatpush3.bf16.msra.mxu1 %v5257_v61 }
 0x5d1   :  { %4909 = vmatprep.subr.bf16.mxu1 %v5258_v0 }
 0x5d4   :  { %4910 = vmatpush3.bf16.msra.mxu1 %v5258_v0 }
 0x5d5   :  { %4911 = vmatprep.subr.bf16.mxu1 %v5259_v1 }
 0x5d8   :  { %4912 = vmatpush3.bf16.msra.mxu1 %v5259_v1 }
 0x5d9   :  { %4913 = vmatprep.subr.bf16.mxu1 %v5260_v16 }
 0x5dc   :  { %4914 = vmatpush3.bf16.msra.mxu1 %v5260_v16 }
 0x5dd   :  { %4915 = vmatprep.subr.bf16.mxu1 %v5261_v17 }
 0x5e0   :  { %4916 = vmatpush3.bf16.msra.mxu1 %v5261_v17 }
 0x5e1   :  { %4917 = vmatprep.subr.bf16.mxu1 %v5262_v18 }
 0x5e4   :  { %4918 = vmatpush3.bf16.msra.mxu1 %v5262_v18 }
 0x5e5   :  { %4919 = vmatprep.subr.bf16.mxu1 %v5263_v19 }
 0x5e8   :  { %4920 = vmatpush3.bf16.msra.mxu1 %v5263_v19 }
 0x5e9   :  { %4925 = vmatprep.subr.bf16.mxu1 %v5264_v21 }
 0x5eb   :  { %4922 = vmatmul.mubr.bf16.vlgmr.msra.gmra.mrb[52].mxu1 %v2850_v30 }
 0x5ec   :  { %4926 = vmatpush3.bf16.msra.mxu1 %v5264_v21  ;;  %4941 = vmatprep.mubr.bf16.mxu1 %v2851_v38 }
 0x5ed   :  { %4927 = vmatprep.subr.bf16.mxu1 %v5265_v22 }
 0x5f0   :  { %4928 = vmatpush3.bf16.msra.mxu1 %v5265_v22 }
 0x5f1   :  { %4929 = vmatprep.subr.bf16.mxu1 %v5266_v12 }
 0x5f4   :  { %4930 = vmatpush3.bf16.msra.mxu1 %v5266_v12 }
 0x5f5   :  { %4931 = vmatprep.subr.bf16.mxu1 %v5267_v23 }
 0x5f8   :  { %4932 = vmatpush3.bf16.msra.mxu1 %v5267_v23 }
 0x5f9   :  { %4933 = vmatprep.subr.bf16.mxu1 %v5268_v24 }
 0x5fc   :  { %4934 = vmatpush3.bf16.msra.mxu1 %v5268_v24 }
 0x5fd   :  { %4935 = vmatprep.subr.bf16.mxu1 %v5269_v25 }
 0x600   :  { %4936 = vmatpush3.bf16.msra.mxu1 %v5269_v25 }
 0x601   :  { %4937 = vmatprep.subr.bf16.mxu1 %v5270_v27 }
 0x604   :  { %4938 = vmatpush3.bf16.msra.mxu1 %v5270_v27 }
 0x605   :  { %4939 = vmatprep.subr.bf16.mxu1 %v5271_v28 }
 0x608   :  { %4940 = vmatpush3.bf16.msra.mxu1 %v5271_v28 }
 0x609   :  { %4945 = vmatprep.subr.bf16.mxu1 %v5272_v29 }
 0x60b   :  { %4942 = vmatmul.mubr.bf16.vlgmr.msra.gmra.mrb[52].mxu1 %v2852_v11 }
 0x60c   :  { %4946 = vmatpush3.bf16.msra.mxu1 %v5272_v29  ;;  %4961 = vmatprep.mubr.bf16.mxu1 %v2853_v26 }
 0x60d   :  { %4947 = vmatprep.subr.bf16.mxu1 %v5273_v31 }
 0x610   :  { %4948 = vmatpush3.bf16.msra.mxu1 %v5273_v31 }
 0x611   :  { %4949 = vmatprep.subr.bf16.mxu1 %v5274_v32 }
 0x614   :  { %4950 = vmatpush3.bf16.msra.mxu1 %v5274_v32 }
 0x615   :  { %4951 = vmatprep.subr.bf16.mxu1 %v5275_v35 }
 0x618   :  { %4952 = vmatpush3.bf16.msra.mxu1 %v5275_v35 }
 0x619   :  { %4953 = vmatprep.subr.bf16.mxu1 %v5276_v36 }
 0x61c   :  { %4954 = vmatpush3.bf16.msra.mxu1 %v5276_v36 }
 0x61d   :  { %4955 = vmatprep.subr.bf16.mxu1 %v5277_v37 }
 0x620   :  { %4956 = vmatpush3.bf16.msra.mxu1 %v5277_v37 }
 0x621   :  { %4957 = vmatprep.subr.bf16.mxu1 %v5278_v39 }
 0x624   :  { %4958 = vmatpush3.bf16.msra.mxu1 %v5278_v39 }
 0x625   :  { %4959 = vmatprep.subr.bf16.mxu1 %v5279_v45 }
 0x628   :  { %4960 = vmatpush3.bf16.msra.mxu1 %v5279_v45 }
 0x62b   :  { %4962 = vmatmul.mubr.bf16.vlgmr.msra.gmra.mrb[52].mxu1 %v2854_v20 }
 0x6fe   :  { %v4963_v53 = vpop.f32.mrb[52].mxu1 }
 0x6ff   :  { %v3909_v30 = vadd.f32 %v4963_v53, %v4193_v47  ;;  %v3881_v33 = vpop.f32.mrb[53].mxu1 }
 0x700   :  { %v3907_v34 = vadd.f32 %v4193_v47, %v3881_v33  ;;  %v4964_v40 = vpop.f32.mrb[54].mxu1 }
 0x701   :  { %3913 = vst [vmem:[#allocation11 + $0x10] sm:$0xff] %v3909_v30  ;;  %v3910_v43 = vadd.f32 %v4964_v40, %v4193_v47  ;;  %v3884_v44 = vpop.f32.mrb[55].mxu1 }
 0x702   :  { %3911 = vst [vmem:[#allocation11] sm:$0xff] %v3907_v34  ;;  %v3908_v55 = vadd.f32 %v4193_v47, %v3884_v44 }
 0x703   :  { %3914 = vst [vmem:[#allocation11 + $0x18] sm:$0xff] %v3910_v43 }
 0x704   :  { %3912 = vst [vmem:[#allocation11 + $0x8] sm:$0xff] %v3908_v55 }
 0x705   :  { %5403 = shalt.err (!%p5400_p2)
}
 0x706   :  { %s5404_s7 = scalar_lea.hbm %s6178_s11, 512 }
 0x707   :  { %p5405_p3 = scmp.ne.s32.totalorder %s6178_s11, %s5404_s7  ;;  %p5408_p4 = scmp.lt.u32.totalorder %s5404_s7, %s6178_s11 }
 0x709   :  { %p5410_p5 = pnand %p5408_p4, %p5405_p3 }
 0x70b   :  { %5413 = shalt.err (!%p5410_p5)
}
 0x70c   :  { %s5430_s2 = smov 128   ;;  %s5431_s23 = smov 8  }
 0x70d   :  { %3926 = dma.vmem_to_hbm [thread:$0]  %s3921_s16, 512, %s6178_s11, [#allocation4], %s5430_s2, %s5430_s2, %s5431_s23  }
 0x70e   :  { %5420 = dma.done.wait [#allocation4], 512  }
 0x70f   :  { %5421 = vsyncadd [#allocation4], 4294966784 }
 0x710   :  { %3930 = vsyncpa [#allocation3], 1 }
 0x711   :  { %3931 = vsyncpa [#allocation6], 1 }
 0x712   :  { %3932 = vsyncpa [#allocation9], 1 }
 0x713   :  { %3933 = vsyncpa [#allocation4], 1 }

</bundles_post_ra>
